<compile_context>
chip_gen: v5e
topology: v5e:2x2
jax: 0.10.0
libtpu: 0.0.40
codegen_flags: <defaults>
</compile_context>

<pallas_src>
import jax
import jax.numpy as jnp
from jax.experimental import pallas as pl
from jax.experimental.pallas import tpu as pltpu


def _head_kernel(pooled_ref, w1_ref, b1_ref, w2_ref, b2_ref, o_ref):
    # pooled_ref: (TN, 1024) f32, lane-dense block of globally-averaged features.
    # fc1 on the MXU: bf16 operands, f32 accumulation.
    p = pooled_ref[...].astype(jnp.bfloat16)
    h = jnp.dot(p, w1_ref[...], preferred_element_type=jnp.float32)
    h = jnp.maximum(h + b1_ref[...], 0.0)            # bias + ReLU in f32

    # BatchNorm1d (eval) is folded into w2/b2 in the wrapper.
    # Dropout(0.3) -> identity in eval mode.

    # output Linear(512, 1) + sigmoid as a lane reduction on the VPU/XLU
    # (avoids a 1-lane-wide MXU matmul / masked 1-lane matmul output).
    logit = jnp.sum(h * w2_ref[...], axis=-1, keepdims=True) + b2_ref[...]
    o_ref[...] = jax.nn.sigmoid(logit)


def _default_batch_tile():
    # Generation-aware M tile: v5e -> 128 (matches its 128-wide MXU and lower
    # HBM BW); v6e/v7x -> 256 (fills the 256x256 MXU).  Cheap, safe probe.
    try:
        kind = jax.devices()[0].device_kind.lower()
    except Exception:
        return 256
    return 128 if "v5" in kind else 256


def deepfake_head(x_nchw, params, *, batch_tile=None):
    """x_nchw: (N, C=1024, H, W) float32 -> (N, 1) float32 sigmoid prob."""
    n, c, h, w = x_nchw.shape
    assert c == 1024, "fc1 expects 1024 input features"

    w1, b1, scale, shift, w2, b2 = params

    # AdaptiveAvgPool2d((1,1)) + flatten: plain XLA reduce over the contiguous
    # H*W minor axis.  x is read from HBM exactly once; the kernel then gets a
    # lane-dense (N, 1024) input (no 128/HW VMEM inflation, no XLU lane-reduce,
    # >=512 B DMA granules for the dominant read).
    pooled = jnp.mean(x_nchw, axis=(2, 3))                        # (N, 1024) f32

    # bf16 matmul operand for the MXU (halves w1's VMEM/HBM footprint).
    w1_bf16 = w1.astype(jnp.bfloat16)                             # (1024, 512)

    # Fold BatchNorm1d (eval) into the output Linear (exact; no nonlinearity
    # between bn1 and output):  (h*scale + shift) @ w2 + b2
    #                         =  h @ (scale.T * w2) + (shift @ w2 + b2)
    w2_eff = (w2[:, 0] * scale[0, :]).reshape(1, 512)             # (1, 512) f32
    b2_eff = (b2 + shift @ w2).reshape(1, 1)                      # (1, 1)  f32

    if batch_tile is None:
        batch_tile = _default_batch_tile()
    # Full batch if it fits in one tile; otherwise any N > batch_tile yields
    # >= 2 grid steps, so the "parallel" batch axis can shard across the two
    # v7x TensorCores.
    tn = n if n <= batch_tile else batch_tile
    grid = (pl.cdiv(n, tn),)

    cost = pl.CostEstimate(
        flops=2 * n * c * 512 + 2 * n * 512,
        transcendentals=n,                                        # sigmoid
        bytes_accessed=n * c * 4 + c * 512 * 2 + 3 * 512 * 4 + n * 4,
    )

    out = pl.pallas_call(
        _head_kernel,
        out_shape=jax.ShapeDtypeStruct((n, 1), jnp.float32),
        grid=grid,
        in_specs=[
            pl.BlockSpec((tn, c), lambda i: (i, 0)),      # pooled, batch-tiled
            pl.BlockSpec((c, 512), lambda i: (0, 0)),     # w1 (bf16, resident)
            pl.BlockSpec((1, 512), lambda i: (0, 0)),     # b1
            pl.BlockSpec((1, 512), lambda i: (0, 0)),     # w2 row (BN folded)
            pl.BlockSpec((1, 1), lambda i: (0, 0)),       # b2 (BN folded)
        ],
        out_specs=pl.BlockSpec((tn, 1), lambda i: (i, 0)),
        compiler_params=pltpu.CompilerParams(
            dimension_semantics=("parallel",),            # megacore on v7x
            # Working set is ~5 MiB; 32 MiB is explicit headroom that is safe
            # on v5e/v6e (128 MiB physical) and leaves margin on v7x (64 MiB).
            vmem_limit_bytes=32 * 1024 * 1024,
        ),
        cost_estimate=cost,
    )(pooled, w1_bf16, b1, w2_eff, b2_eff)
    return out


def make_params(key):
    k1, k2, k3, k4 = jax.random.split(key, 4)
    eps = 1e-5
    # fc1: Linear(1024, 512), stored as (in, out) for x @ W.
    w1 = jax.random.normal(k1, (1024, 512), jnp.float32) * 0.02
    b1 = jnp.zeros((1, 512), jnp.float32)
    # bn1: BatchNorm1d(512) running stats + affine, folded to scale/shift.
    gamma = jnp.ones((1, 512), jnp.float32)
    beta = jnp.zeros((1, 512), jnp.float32)
    running_mean = jax.random.normal(k2, (1, 512), jnp.float32) * 0.1
    running_var = jnp.abs(jax.random.normal(k3, (1, 512), jnp.float32)) + 0.5
    scale = gamma / jnp.sqrt(running_var + eps)
    shift = beta - running_mean * scale
    # output: Linear(512, 1).
    w2 = jax.random.normal(k4, (512, 1), jnp.float32) * 0.02
    b2 = jnp.zeros((1, 1), jnp.float32)
    return (w1, b1, scale, shift, w2, b2)


def reference(x_nchw, params):
    """Reference with the same numerics (bf16 fc1 operands, f32 accumulation),
    but with BatchNorm applied in its unfolded form."""
    w1, b1, scale, shift, w2, b2 = params
    pooled = jnp.mean(x_nchw, axis=(2, 3))                        # (N, 1024)
    h = jnp.dot(pooled.astype(jnp.bfloat16), w1.astype(jnp.bfloat16),
                preferred_element_type=jnp.float32) + b1
    h = jnp.maximum(h, 0.0)
    h = h * scale + shift                                         # BN (eval)
    return jax.nn.sigmoid(h @ w2 + b2)


if __name__ == "__main__":
    key = jax.random.PRNGKey(0)
    kx, kp = jax.random.split(key)
    # Small shapes: batch=2, channels=1024 (fixed by fc1), spatial=4x4.
    x = jax.random.normal(kx, (2, 1024, 4, 4), jnp.float32)
    params = make_params(kp)

    out = deepfake_head(x, params)
    out = jax.block_until_ready(out)

    ref = reference(x, params)
    assert out.shape == (2, 1)
    assert bool(jnp.all(jnp.isfinite(out)))
    assert jnp.allclose(out, ref, atol=1e-4, rtol=1e-4)
    print("KERNEL_OK")
</pallas_src>

<mosaic_0001>
module attributes {stable_mosaic.version = 11 : i64} {
  func.func @_head_kernel(%arg0: i32, %arg1: memref<2x1024xf32, #tpu.memory_space<vmem>>, %arg2: memref<1024x512xbf16, #tpu.memory_space<vmem>>, %arg3: memref<1x512xf32, #tpu.memory_space<vmem>>, %arg4: memref<1x512xf32, #tpu.memory_space<vmem>>, %arg5: memref<1x1xf32, #tpu.memory_space<vmem>>, %arg6: memref<2x1xf32, #tpu.memory_space<vmem>>) attributes {dimension_semantics = [#tpu.dimension_semantics<parallel>], iteration_bounds = array<i64: 1>, scalar_prefetch = 0 : i64, scratch_operands = 0 : i64, tpu.core_type = #tpu.core_type<tc>, window_params = [{transform_indices = @transform_0, window_bounds = array<i64: 2, 1024>}, {pipeline_mode = #tpu.pipeline_mode<synchronous>, transform_indices = @transform_1, window_bounds = array<i64: 1024, 512>}, {pipeline_mode = #tpu.pipeline_mode<synchronous>, transform_indices = @transform_2, window_bounds = array<i64: 1, 512>}, {pipeline_mode = #tpu.pipeline_mode<synchronous>, transform_indices = @transform_3, window_bounds = array<i64: 1, 512>}, {pipeline_mode = #tpu.pipeline_mode<synchronous>, transform_indices = @transform_4, window_bounds = array<i64: 1, 1>}, {transform_indices = @transform_5, window_bounds = array<i64: 2, 1>}]} {
    %c0 = arith.constant 0 : index
    %c0_0 = arith.constant 0 : index
    %0 = vector.load %arg1[%c0, %c0_0] : memref<2x1024xf32, #tpu.memory_space<vmem>>, vector<2x1024xf32>
    %1 = arith.truncf %0 : vector<2x1024xf32> to vector<2x1024xbf16>
    %c0_1 = arith.constant 0 : index
    %c0_2 = arith.constant 0 : index
    %2 = vector.load %arg2[%c0_1, %c0_2] : memref<1024x512xbf16, #tpu.memory_space<vmem>>, vector<1024x512xbf16>
    %cst = arith.constant dense<0.000000e+00> : vector<2x512xf32>
    %3 = tpu.matmul %1, %2, %cst {dimension_numbers = #tpu.dot_dimension_numbers<[1], [0], [0], [1], [0, 0, 1, 1], [], []>} : vector<2x1024xbf16>, vector<1024x512xbf16>, vector<2x512xf32> -> vector<2x512xf32>
    %c0_3 = arith.constant 0 : index
    %c0_4 = arith.constant 0 : index
    %4 = vector.load %arg3[%c0_3, %c0_4] : memref<1x512xf32, #tpu.memory_space<vmem>>, vector<1x512xf32>
    %5 = vector.broadcast %4 : vector<1x512xf32> to vector<2x512xf32>
    %6 = arith.addf %3, %5 : vector<2x512xf32>
    %cst_5 = arith.constant 0.000000e+00 : f32
    %7 = vector.broadcast %cst_5 : f32 to vector<2x512xf32>
    %8 = arith.maximumf %6, %7 : vector<2x512xf32>
    %c0_6 = arith.constant 0 : index
    %c0_7 = arith.constant 0 : index
    %9 = vector.load %arg4[%c0_6, %c0_7] : memref<1x512xf32, #tpu.memory_space<vmem>>, vector<1x512xf32>
    %10 = vector.broadcast %9 : vector<1x512xf32> to vector<2x512xf32>
    %11 = arith.mulf %8, %10 : vector<2x512xf32>
    %cst_8 = arith.constant dense<0.000000e+00> : vector<2xf32>
    %12 = vector.multi_reduction <add>, %11, %cst_8 [1] : vector<2x512xf32> to vector<2xf32>
    %13 = vector.shape_cast %12 : vector<2xf32> to vector<2x1xf32>
    %c0_9 = arith.constant 0 : index
    %c0_10 = arith.constant 0 : index
    %14 = vector.load %arg5[%c0_9, %c0_10] : memref<1x1xf32, #tpu.memory_space<vmem>>, vector<1x1xf32>
    %15 = vector.broadcast %14 : vector<1x1xf32> to vector<2x1xf32>
    %16 = arith.addf %13, %15 : vector<2x1xf32>
    %17 = arith.negf %16 : vector<2x1xf32>
    %18 = math.exp %17 : vector<2x1xf32>
    %cst_11 = arith.constant 1.000000e+00 : f32
    %19 = vector.broadcast %cst_11 : f32 to vector<2x1xf32>
    %20 = arith.addf %19, %18 : vector<2x1xf32>
    %21 = arith.divf %19, %20 : vector<2x1xf32>
    %c0_12 = arith.constant 0 : index
    %c0_13 = arith.constant 0 : index
    %22 = vector.load %arg6[%c0_12, %c0_13] : memref<2x1xf32, #tpu.memory_space<vmem>>, vector<2x1xf32>
    tpu.vector_store %arg6[%c0_12, %c0_13], %21 {strides = array<i32>} : memref<2x1xf32, #tpu.memory_space<vmem>>, vector<2x1xf32>,
    return
  }
  func.func @transform_0(%arg0: i32) -> (i32, i32) {
    %c0_i32 = arith.constant 0 : i32
    %c0_i32_0 = arith.constant 0 : i32
    return %arg0, %c0_i32 : i32, i32
  }
  func.func @transform_1(%arg0: i32) -> (i32, i32) {
    %c0_i32 = arith.constant 0 : i32
    %c0_i32_0 = arith.constant 0 : i32
    %c0_i32_1 = arith.constant 0 : i32
    return %c0_i32, %c0_i32_0 : i32, i32
  }
  func.func @transform_2(%arg0: i32) -> (i32, i32) {
    %c0_i32 = arith.constant 0 : i32
    %c0_i32_0 = arith.constant 0 : i32
    %c0_i32_1 = arith.constant 0 : i32
    return %c0_i32, %c0_i32_0 : i32, i32
  }
  func.func @transform_3(%arg0: i32) -> (i32, i32) {
    %c0_i32 = arith.constant 0 : i32
    %c0_i32_0 = arith.constant 0 : i32
    %c0_i32_1 = arith.constant 0 : i32
    return %c0_i32, %c0_i32_0 : i32, i32
  }
  func.func @transform_4(%arg0: i32) -> (i32, i32) {
    %c0_i32 = arith.constant 0 : i32
    %c0_i32_0 = arith.constant 0 : i32
    %c0_i32_1 = arith.constant 0 : i32
    return %c0_i32, %c0_i32_0 : i32, i32
  }
  func.func @transform_5(%arg0: i32) -> (i32, i32) {
    %c0_i32 = arith.constant 0 : i32
    %c0_i32_0 = arith.constant 0 : i32
    return %arg0, %c0_i32 : i32, i32
  }
}

</mosaic_0001>

<bundles_post_ra>
// kernel: tpu_custom_call.1
= control target key start
LH: loop header
LB: loop body
LE: loop exit
PB: predicated region body
PF: predicated region fallthrough
CT: control target
= control target key end

     0   :  { %s3605_s0 = inlined_call_operand.hbm [shape: f32[2,1024], index: 0, kind: input, shape index: {}]   ;;  %s3606_s1 = inlined_call_operand.hbm [shape: bf16[1024,512], index: 1, kind: input, shape index: {}]   ;;  %s3607_s2 = inlined_call_operand.hbm [shape: f32[1,512], index: 2, kind: input, shape index: {}]   ;;  %s3608_s3 = inlined_call_operand.vmem [shape: f32[1,512], index: 3, kind: input, shape index: {}]   ;;  %s3609_s4 = inlined_call_operand.<no memory space> [shape: f32[1,1], index: 4, kind: input, shape index: {}]   ;;  %s3610_s5 = inlined_call_operand.vmem [shape: f32[2,1], index: 5, kind: output, shape index: {}]  }
   0x1   :  { %v10_v0 = vstv %s3609_s4 }
   0x2   :  { %11 = vst [vmem:[#allocation2] sm:$0x1] %v10_v0 }
   0x3   :  { %12 = vsyncpa [#allocation4], 0 }
   0x4   :  { %13 = vsyncpa [#allocation6], 0  ;;  %s29_s22 = sshll.u32 %s3606_s1, 4  ;;  %s3485_s23 = smov [#allocation5]   ;;  %s30_s22 = int_to_ptr.hbm [resolvable:$true] %s29_s22 }
   0x5   :  { %s31_s24 = sshll.u32 %s3485_s23, 4  ;;  %s19_s27 = sshll.u32 %s3605_s0, 4  ;;  %s32_s24 = int_to_ptr.vmem [resolvable:$true] %s31_s24  ;;  %s20_s27 = int_to_ptr.hbm [resolvable:$true] %s19_s27 }
   0x6   :  { %s3486_s28 = smov 256   ;;  %s3487_s29 = smov 16  }
   0x7   :  { %37 = dma.hbm_to_vmem [thread:$0]  %s30_s22, 32768, %s32_s24, [#allocation6], %s3486_s28, %s3486_s28, %s3487_s29  }
   0x8   :  { %s3488_s4 = smov [#allocation3]   ;;  %s43_s8 = sshll.u32 %s3607_s2, 4  ;;  %s44_s8 = int_to_ptr.hbm [resolvable:$true] %s43_s8 }
   0x9   :  { %s21_s30 = sshll.u32 %s3488_s4, 4  ;;  %s3489_s1 = smov [#allocation7]   ;;  %s22_s30 = int_to_ptr.vmem [resolvable:$true] %s21_s30 }
   0xa   :  { %24 = dma.hbm_to_vmem [thread:$0]  %s20_s27, 256, %s22_s30, [#allocation4]  }
   0xb   :  { %s45_s9 = sshll.u32 %s3489_s1, 4  ;;  %s46_s9 = int_to_ptr.vmem [resolvable:$true] %s45_s9 }
   0xc   :  { %48 = dma.hbm_to_vmem [thread:$0]  %s44_s8, 64, %s46_s9, [#allocation6]  }
   0xd   :  { %3481 = dma.done.wait [#allocation4], 256  }
   0xe   :  { %3482 = vsyncadd [#allocation4], 4294967040 }
   0xf   :  { %3483 = dma.done.wait [#allocation6], 32832  }
  0x10   :  { %3484 = vsyncadd [#allocation6], 4294934464  ;;  %v2232_v1 = vld [vmem:[#allocation5 + $0xe0] sm:$0xf]  ;;  %v3173_v2 = vld [vmem:[#allocation5 + $0xec] sm:$0xf0] }
  0x11   :  { %v2360_v3 = vld [vmem:[#allocation5 + $0x1e0] sm:$0xf]  ;;  %v2233_v4 = vor.u32 %v3173_v2, %v2232_v1  ;;  %v3205_v5 = vld [vmem:[#allocation5 + $0x1ec] sm:$0xf0]  ;;  %vm2076_vm0 = vcmask 1041408   ;;  %vm2110_vm4 = vcmask 1024  }
  0x12   :  { %v2488_v6 = vld [vmem:[#allocation5 + $0x2e0] sm:$0xf]  ;;  %v3237_v7 = vld [vmem:[#allocation5 + $0x2ec] sm:$0xf0]  ;;  %v2361_v8 = vor.u32 %v3205_v5, %v2360_v3 }
  0x13   :  { %v2489_v9 = vor.u32 %v3237_v7, %v2488_v6  ;;  %v2616_v10 = vld [vmem:[#allocation5 + $0x3e0] sm:$0xf]  ;;  %v3269_v11 = vld [vmem:[#allocation5 + $0x3ec] sm:$0xf0]  ;;  %1642 = vmatpush.bf16.msra.mxu0 %v2233_v4 }
  0x14   :  { %v2216_v12 = vld [vmem:[#allocation5 + $0xc0] sm:$0xf]  ;;  %v2617_v13 = vor.u32 %v3269_v11, %v2616_v10  ;;  %v3169_v14 = vld [vmem:[#allocation5 + $0xcc] sm:$0xf0]  ;;  %1655 = vmatpush.bf16.msra.mxu1 %v2361_v8 }
  0x15   :  { %v2344_v15 = vld [vmem:[#allocation5 + $0x1c0] sm:$0xf]  ;;  %v3201_v16 = vld [vmem:[#allocation5 + $0x1cc] sm:$0xf0]  ;;  %1668 = vmatpush.bf16.msra.mxu2 %v2489_v9  ;;  %v2217_v17 = vor.u32 %v3169_v14, %v2216_v12 }
  0x16   :  { %v2345_v18 = vor.u32 %v3201_v16, %v2344_v15  ;;  %v2472_v19 = vld [vmem:[#allocation5 + $0x2c0] sm:$0xf]  ;;  %v3233_v20 = vld [vmem:[#allocation5 + $0x2cc] sm:$0xf0]  ;;  %1681 = vmatpush.bf16.msra.mxu3 %v2617_v13 }
  0x17   :  { %v2600_v21 = vld [vmem:[#allocation5 + $0x3c0] sm:$0xf]  ;;  %v2473_v22 = vor.u32 %v3233_v20, %v2472_v19  ;;  %v3265_v23 = vld [vmem:[#allocation5 + $0x3cc] sm:$0xf0]  ;;  %1643 = vmatpush.bf16.msra.mxu0 %v2217_v17 }
  0x18   :  { %v2200_v24 = vld [vmem:[#allocation5 + $0xa0] sm:$0xf]  ;;  %v3165_v25 = vld [vmem:[#allocation5 + $0xac] sm:$0xf0]  ;;  %v2601_v26 = vor.u32 %v3265_v23, %v2600_v21  ;;  %1656 = vmatpush.bf16.msra.mxu1 %v2345_v18 }
  0x19   :  { %v2328_v27 = vld [vmem:[#allocation5 + $0x1a0] sm:$0xf]  ;;  %v3197_v28 = vld [vmem:[#allocation5 + $0x1ac] sm:$0xf0]  ;;  %v2201_v30 = vor.u32 %v3165_v25, %v2200_v24  ;;  %1669 = vmatpush.bf16.msra.mxu2 %v2473_v22 }
  0x1a   :  { %v2456_v29 = vld [vmem:[#allocation5 + $0x2a0] sm:$0xf]  ;;  %v3229_v31 = vld [vmem:[#allocation5 + $0x2ac] sm:$0xf0]  ;;  %v2329_v34 = vor.u32 %v3197_v28, %v2328_v27  ;;  %1682 = vmatpush.bf16.msra.mxu3 %v2601_v26 }
  0x1b   :  { %v2584_v32 = vld [vmem:[#allocation5 + $0x3a0] sm:$0xf]  ;;  %v3261_v33 = vld [vmem:[#allocation5 + $0x3ac] sm:$0xf0]  ;;  %v2457_v35 = vor.u32 %v3229_v31, %v2456_v29  ;;  %1644 = vmatpush.bf16.msra.mxu0 %v2201_v30 }
  0x1c   :  { %v2184_v36 = vld [vmem:[#allocation5 + $0x80] sm:$0xf]  ;;  %v3161_v37 = vld [vmem:[#allocation5 + $0x8c] sm:$0xf0]  ;;  %v2585_v39 = vor.u32 %v3261_v33, %v2584_v32  ;;  %1657 = vmatpush.bf16.msra.mxu1 %v2329_v34 }
  0x1d   :  { %v2312_v38 = vld [vmem:[#allocation5 + $0x180] sm:$0xf]  ;;  %v3193_v40 = vld [vmem:[#allocation5 + $0x18c] sm:$0xf0]  ;;  %v2185_v45 = vor.u32 %v3161_v37, %v2184_v36  ;;  %1670 = vmatpush.bf16.msra.mxu2 %v2457_v35 }
  0x1e   :  { %v2440_v41 = vld [vmem:[#allocation5 + $0x280] sm:$0xf]  ;;  %v3225_v42 = vld [vmem:[#allocation5 + $0x28c] sm:$0xf0]  ;;  %v2313_v46 = vor.u32 %v3193_v40, %v2312_v38  ;;  %1683 = vmatpush.bf16.msra.mxu3 %v2585_v39 }
  0x1f   :  { %v2568_v43 = vld [vmem:[#allocation5 + $0x380] sm:$0xf]  ;;  %v3257_v44 = vld [vmem:[#allocation5 + $0x38c] sm:$0xf0]  ;;  %v2441_v47 = vor.u32 %v3225_v42, %v2440_v41  ;;  %1645 = vmatpush.bf16.msra.mxu0 %v2185_v45 }
  0x20   :  { %v2168_v48 = vld [vmem:[#allocation5 + $0x60] sm:$0xf]  ;;  %v3157_v49 = vld [vmem:[#allocation5 + $0x6c] sm:$0xf0]  ;;  %v2569_v51 = vor.u32 %v3257_v44, %v2568_v43  ;;  %1658 = vmatpush.bf16.msra.mxu1 %v2313_v46 }
  0x21   :  { %v2296_v50 = vld [vmem:[#allocation5 + $0x160] sm:$0xf]  ;;  %v3189_v52 = vld [vmem:[#allocation5 + $0x16c] sm:$0xf0]  ;;  %v2169_v57 = vor.u32 %v3157_v49, %v2168_v48  ;;  %1671 = vmatpush.bf16.msra.mxu2 %v2441_v47 }
  0x22   :  { %v2424_v53 = vld [vmem:[#allocation5 + $0x260] sm:$0xf]  ;;  %v3221_v54 = vld [vmem:[#allocation5 + $0x26c] sm:$0xf0]  ;;  %v2297_v58 = vor.u32 %v3189_v52, %v2296_v50  ;;  %1684 = vmatpush.bf16.msra.mxu3 %v2569_v51 }
  0x23   :  { %v2552_v55 = vld [vmem:[#allocation5 + $0x360] sm:$0xf]  ;;  %v3253_v56 = vld [vmem:[#allocation5 + $0x36c] sm:$0xf0]  ;;  %v2425_v59 = vor.u32 %v3221_v54, %v2424_v53  ;;  %1646 = vmatpush.bf16.msra.mxu0 %v2169_v57 }
  0x24   :  { %v2152_v60 = vld [vmem:[#allocation5 + $0x40] sm:$0xf]  ;;  %v3153_v61 = vld [vmem:[#allocation5 + $0x4c] sm:$0xf0]  ;;  %v2553_v63 = vor.u32 %v3253_v56, %v2552_v55  ;;  %1659 = vmatpush.bf16.msra.mxu1 %v2297_v58 }
  0x25   :  { %v2280_v62 = vld [vmem:[#allocation5 + $0x140] sm:$0xf]  ;;  %v3185_v0 = vld [vmem:[#allocation5 + $0x14c] sm:$0xf0]  ;;  %v2153_v5 = vor.u32 %v3153_v61, %v2152_v60  ;;  %1672 = vmatpush.bf16.msra.mxu2 %v2425_v59 }
  0x26   :  { %v2408_v1 = vld [vmem:[#allocation5 + $0x240] sm:$0xf]  ;;  %v3217_v2 = vld [vmem:[#allocation5 + $0x24c] sm:$0xf0]  ;;  %v2281_v6 = vor.u32 %v3185_v0, %v2280_v62  ;;  %1685 = vmatpush.bf16.msra.mxu3 %v2553_v63 }
  0x27   :  { %v2536_v3 = vld [vmem:[#allocation5 + $0x340] sm:$0xf]  ;;  %v3249_v4 = vld [vmem:[#allocation5 + $0x34c] sm:$0xf0]  ;;  %v2409_v7 = vor.u32 %v3217_v2, %v2408_v1  ;;  %1647 = vmatpush.bf16.msra.mxu0 %v2153_v5 }
  0x28   :  { %v2136_v8 = vld [vmem:[#allocation5 + $0x20] sm:$0xf]  ;;  %v3149_v9 = vld [vmem:[#allocation5 + $0x2c] sm:$0xf0]  ;;  %v2537_v11 = vor.u32 %v3249_v4, %v2536_v3  ;;  %1660 = vmatpush.bf16.msra.mxu1 %v2281_v6 }
  0x29   :  { %v2264_v10 = vld [vmem:[#allocation5 + $0x120] sm:$0xf]  ;;  %v3181_v12 = vld [vmem:[#allocation5 + $0x12c] sm:$0xf0]  ;;  %v2137_v17 = vor.u32 %v3149_v9, %v2136_v8  ;;  %1673 = vmatpush.bf16.msra.mxu2 %v2409_v7 }
  0x2a   :  { %v2392_v13 = vld [vmem:[#allocation5 + $0x220] sm:$0xf]  ;;  %v3213_v14 = vld [vmem:[#allocation5 + $0x22c] sm:$0xf0]  ;;  %v2265_v20 = vor.u32 %v3181_v12, %v2264_v10  ;;  %1686 = vmatpush.bf16.msra.mxu3 %v2537_v11 }
  0x2b   :  { %v2520_v15 = vld [vmem:[#allocation5 + $0x320] sm:$0xf]  ;;  %v3245_v16 = vld [vmem:[#allocation5 + $0x32c] sm:$0xf0]  ;;  %v2393_v21 = vor.u32 %v3213_v14, %v2392_v13  ;;  %1648 = vmatpush.bf16.msra.mxu0 %v2137_v17 }
  0x2c   :  { %v2120_v18 = vld [vmem:[#allocation5] sm:$0xf]  ;;  %v3145_v19 = vld [vmem:[#allocation5 + $0xc] sm:$0xf0]  ;;  %v2521_v25 = vor.u32 %v3245_v16, %v2520_v15  ;;  %1661 = vmatpush.bf16.msra.mxu1 %v2265_v20 }
  0x2d   :  { %v2248_v22 = vld [vmem:[#allocation5 + $0x100] sm:$0xf]  ;;  %v3177_v23 = vld [vmem:[#allocation5 + $0x10c] sm:$0xf0]  ;;  %v2121_v32 = vor.u32 %v3145_v19, %v2120_v18  ;;  %1674 = vmatpush.bf16.msra.mxu2 %v2393_v21 }
  0x2e   :  { %v2376_v24 = vld [vmem:[#allocation5 + $0x200] sm:$0xf]  ;;  %v3209_v26 = vld [vmem:[#allocation5 + $0x20c] sm:$0xf0]  ;;  %v2249_v36 = vor.u32 %v3177_v23, %v2248_v22  ;;  %1687 = vmatpush.bf16.msra.mxu3 %v2521_v25 }
  0x2f   :  { %v2504_v27 = vld [vmem:[#allocation5 + $0x300] sm:$0xf]  ;;  %v3241_v28 = vld [vmem:[#allocation5 + $0x30c] sm:$0xf0]  ;;  %v2377_v37 = vor.u32 %v3209_v26, %v2376_v24  ;;  %1649 = vmatpush.bf16.msra.mxu0 %v2121_v32 }
  0x30   :  { %v2744_v29 = vld [vmem:[#allocation5 + $0x4e0] sm:$0xf]  ;;  %v3301_v30 = vld [vmem:[#allocation5 + $0x4ec] sm:$0xf0]  ;;  %v2505_v40 = vor.u32 %v3241_v28, %v2504_v27  ;;  %1662 = vmatpush.bf16.msra.mxu1 %v2249_v36 }
  0x31   :  { %v2872_v31 = vld [vmem:[#allocation5 + $0x5e0] sm:$0xf]  ;;  %v3333_v33 = vld [vmem:[#allocation5 + $0x5ec] sm:$0xf0]  ;;  %v2745_v41 = vor.u32 %v3301_v30, %v2744_v29  ;;  %1675 = vmatpush.bf16.msra.mxu2 %v2377_v37 }
  0x32   :  { %v3000_v34 = vld [vmem:[#allocation5 + $0x6e0] sm:$0xf]  ;;  %v3365_v35 = vld [vmem:[#allocation5 + $0x6ec] sm:$0xf0]  ;;  %v2873_v42 = vor.u32 %v3333_v33, %v2872_v31  ;;  %1688 = vmatpush.bf16.msra.mxu3 %v2505_v40 }
  0x33   :  { %v3128_v38 = vld [vmem:[#allocation5 + $0x7e0] sm:$0xf]  ;;  %v3397_v39 = vld [vmem:[#allocation5 + $0x7ec] sm:$0xf0]  ;;  %v3001_v43 = vor.u32 %v3365_v35, %v3000_v34  ;;  %1694 = vmatpush.bf16.msrb.mxu0 %v2745_v41 }
  0x34   :  { %v2728_v44 = vld [vmem:[#allocation5 + $0x4c0] sm:$0xf]  ;;  %v3297_v45 = vld [vmem:[#allocation5 + $0x4cc] sm:$0xf0]  ;;  %v3129_v47 = vor.u32 %v3397_v39, %v3128_v38  ;;  %1707 = vmatpush.bf16.msrb.mxu1 %v2873_v42 }
  0x35   :  { %v2856_v46 = vld [vmem:[#allocation5 + $0x5c0] sm:$0xf]  ;;  %v3329_v48 = vld [vmem:[#allocation5 + $0x5cc] sm:$0xf0]  ;;  %v2729_v53 = vor.u32 %v3297_v45, %v2728_v44  ;;  %1720 = vmatpush.bf16.msrb.mxu2 %v3001_v43 }
  0x36   :  { %v2984_v49 = vld [vmem:[#allocation5 + $0x6c0] sm:$0xf]  ;;  %v3361_v50 = vld [vmem:[#allocation5 + $0x6cc] sm:$0xf0]  ;;  %v2857_v54 = vor.u32 %v3329_v48, %v2856_v46  ;;  %1733 = vmatpush.bf16.msrb.mxu3 %v3129_v47 }
  0x37   :  { %v3112_v51 = vld [vmem:[#allocation5 + $0x7c0] sm:$0xf]  ;;  %v3393_v52 = vld [vmem:[#allocation5 + $0x7cc] sm:$0xf0]  ;;  %v2985_v55 = vor.u32 %v3361_v50, %v2984_v49  ;;  %1695 = vmatpush.bf16.msrb.mxu0 %v2729_v53  ;;  %v66_v53 = vld [vmem:[#allocation3 + $0x8] sm:$0xff] }
  0x38   :  { %v2712_v56 = vld [vmem:[#allocation5 + $0x4a0] sm:$0xf]  ;;  %v3293_v57 = vld [vmem:[#allocation5 + $0x4ac] sm:$0xf0]  ;;  %v3113_v59 = vor.u32 %v3393_v52, %v3112_v51  ;;  %1708 = vmatpush.bf16.msrb.mxu1 %v2857_v54  ;;  %71 = vst [vmem:[#allocation1 + $0x20] ss:$4 sm:$0xff] %v66_v53 }
  0x39   :  { %v2840_v58 = vld [vmem:[#allocation5 + $0x5a0] sm:$0xf]  ;;  %v3325_v60 = vld [vmem:[#allocation5 + $0x5ac] sm:$0xf0]  ;;  %v2713_v1 = vor.u32 %v3293_v57, %v2712_v56  ;;  %1721 = vmatpush.bf16.msrb.mxu2 %v2985_v55  ;;  %v3259_v53 = vld [vmem:[#allocation5 + $0x3a4] sm:$0xf] }
  0x3a   :  { %v2968_v61 = vld [vmem:[#allocation5 + $0x6a0] sm:$0xf]  ;;  %v3357_v62 = vld [vmem:[#allocation5 + $0x6ac] sm:$0xf0]  ;;  %v2841_v4 = vor.u32 %v3325_v60, %v2840_v58  ;;  %1734 = vmatpush.bf16.msrb.mxu3 %v3113_v59 }
  0x3b   :  { %v3096_v63 = vld [vmem:[#allocation5 + $0x7a0] sm:$0xf]  ;;  %v3389_v0 = vld [vmem:[#allocation5 + $0x7ac] sm:$0xf0]  ;;  %v2969_v5 = vor.u32 %v3357_v62, %v2968_v61  ;;  %1696 = vmatpush.bf16.msrb.mxu0 %v2713_v1 }
  0x3c   :  { %v2696_v2 = vld [vmem:[#allocation5 + $0x480] sm:$0xf]  ;;  %v65_v3 = vld [vmem:[#allocation3] sm:$0xff]  ;;  %v3097_v8 = vor.u32 %v3389_v0, %v3096_v63  ;;  %1709 = vmatpush.bf16.msrb.mxu1 %v2841_v4 }
  0x3d   :  { %v3289_v6 = vld [vmem:[#allocation5 + $0x48c] sm:$0xf0]  ;;  %v2824_v7 = vld [vmem:[#allocation5 + $0x580] sm:$0xf]  ;;  %69 = vst [vmem:[#allocation1] ss:$4 sm:$0xff] %v65_v3  ;;  %1722 = vmatpush.bf16.msrb.mxu2 %v2969_v5 }
  0x3e   :  { %v3321_v9 = vld [vmem:[#allocation5 + $0x58c] sm:$0xf0]  ;;  %v2952_v10 = vld [vmem:[#allocation5 + $0x680] sm:$0xf]  ;;  %v2697_v14 = vor.u32 %v3289_v6, %v2696_v2  ;;  %1735 = vmatpush.bf16.msrb.mxu3 %v3097_v8  ;;  %v2234_v8 = vld [vmem:[#allocation5 + $0xf0] sm:$0xf0] }
  0x3f   :  { %v3353_v11 = vld [vmem:[#allocation5 + $0x68c] sm:$0xf0]  ;;  %v3080_v12 = vld [vmem:[#allocation5 + $0x780] sm:$0xf]  ;;  %v2825_v16 = vor.u32 %v3321_v9, %v2824_v7  ;;  %v3171_v7 = vld [vmem:[#allocation5 + $0xe4] sm:$0xf] }
  0x40   :  { %v3385_v13 = vld [vmem:[#allocation5 + $0x78c] sm:$0xf0]  ;;  %v2680_v15 = vld [vmem:[#allocation5 + $0x460] sm:$0xf]  ;;  %v2953_v17 = vor.u32 %v3353_v11, %v2952_v10  ;;  %1697 = vmatpush.bf16.msrb.mxu0 %v2697_v14  ;;  %v3203_v9 = vld [vmem:[#allocation5 + $0x1e4] sm:$0xf] }
  0x41   :  { %v3285_v18 = vld [vmem:[#allocation5 + $0x46c] sm:$0xf0]  ;;  %v2808_v19 = vld [vmem:[#allocation5 + $0x560] sm:$0xf]  ;;  %v3081_v21 = vor.u32 %v3385_v13, %v3080_v12  ;;  %1710 = vmatpush.bf16.msrb.mxu1 %v2825_v16  ;;  %v2362_v10 = vld [vmem:[#allocation5 + $0x1f0] sm:$0xf0] }
  0x42   :  { %v3317_v20 = vld [vmem:[#allocation5 + $0x56c] sm:$0xf0]  ;;  %v2936_v22 = vld [vmem:[#allocation5 + $0x660] sm:$0xf]  ;;  %v2681_v28 = vor.u32 %v3285_v18, %v2680_v15  ;;  %1723 = vmatpush.bf16.msrb.mxu2 %v2953_v17  ;;  %v3235_v11 = vld [vmem:[#allocation5 + $0x2e4] sm:$0xf] }
  0x43   :  { %v3349_v23 = vld [vmem:[#allocation5 + $0x66c] sm:$0xf0]  ;;  %v3064_v24 = vld [vmem:[#allocation5 + $0x760] sm:$0xf]  ;;  %v2809_v29 = vor.u32 %v3317_v20, %v2808_v19  ;;  %1736 = vmatpush.bf16.msrb.mxu3 %v3081_v21  ;;  %v2490_v13 = vld [vmem:[#allocation5 + $0x2f0] sm:$0xf0] }
  0x44   :  { %v3381_v25 = vld [vmem:[#allocation5 + $0x76c] sm:$0xf0]  ;;  %v2664_v26 = vld [vmem:[#allocation5 + $0x440] sm:$0xf]  ;;  %v2937_v33 = vor.u32 %v3349_v23, %v2936_v22  ;;  %1698 = vmatpush.bf16.msrb.mxu0 %v2681_v28  ;;  %v3267_v14 = vld [vmem:[#allocation5 + $0x3e4] sm:$0xf]  ;;  %v2237_v22 = vor.u32 %v3171_v7, %v2234_v8 }
  0x45   :  { %v3281_v27 = vld [vmem:[#allocation5 + $0x44c] sm:$0xf0]  ;;  %v2792_v30 = vld [vmem:[#allocation5 + $0x540] sm:$0xf]  ;;  %v3065_v38 = vor.u32 %v3381_v25, %v3064_v24  ;;  %1711 = vmatpush.bf16.msrb.mxu1 %v2809_v29  ;;  %v2618_v15 = vld [vmem:[#allocation5 + $0x3f0] sm:$0xf0]  ;;  %v2365_v25 = vor.u32 %v3203_v9, %v2362_v10 }
  0x46   :  { %v74_v31 = vld.sshfl [vmem:[#allocation1 + $0x10] sm:$0xff pattern:$0x73625140]  ;;  %v72_v32 = vld.sshfl [vmem:[#allocation1] sm:$0xff pattern:$0x73625140]  ;;  %v2665_v46 = vor.u32 %v3281_v27, %v2664_v26  ;;  %1724 = vmatpush.bf16.msrb.mxu2 %v2937_v33  ;;  %v2493_v26 = vor.u32 %v3235_v11, %v2490_v13  ;;  %v2621_v29 = vor.u32 %v3267_v14, %v2618_v15 }
  0x47   :  { %v3532_v34 = vpack.c.bf16 %v74_v31, %v74_v31  ;;  %v3534_v35 = vpack.c.bf16 %v72_v32, %v72_v32  ;;  %v75_v36 = vld.sshfl [vmem:[#allocation1 + $0x18] sm:$0xff pattern:$0x73625140]  ;;  %v73_v37 = vld.sshfl [vmem:[#allocation1 + $0x8] sm:$0xff pattern:$0x73625140]  ;;  %1737 = vmatpush.bf16.msrb.mxu3 %v3065_v38 }
  0x48   :  { %v3313_v39 = vld [vmem:[#allocation5 + $0x54c] sm:$0xf0]  ;;  %v2920_v40 = vld [vmem:[#allocation5 + $0x640] sm:$0xf]  ;;  %v3536_v42 = vpack.c.bf16 %v75_v36, %v75_v36  ;;  %v3538_v43 = vpack.c.bf16 %v73_v37, %v73_v37  ;;  %1699 = vmatpush.bf16.msrb.mxu0 %v2665_v46  ;;  %v3167_v18 = vld [vmem:[#allocation5 + $0xc4] sm:$0xf] }
  0x49   :  { %v3345_v41 = vld [vmem:[#allocation5 + $0x64c] sm:$0xf0]  ;;  %v3048_v44 = vld [vmem:[#allocation5 + $0x740] sm:$0xf]  ;;  %1676 = vmatmul.bf16.vlgmr.msra.gmra.mxu2 %v3532_v34  ;;  %1650 = vmatmul.bf16.vlgmr.msra.gmra.mxu0 %v3534_v35  ;;  %v2793_v49 = vor.u32 %v3313_v39, %v2792_v30  ;;  %v2218_v19 = vld [vmem:[#allocation5 + $0xd0] sm:$0xf0] }
  0x4a   :  { %v3377_v45 = vld [vmem:[#allocation5 + $0x74c] sm:$0xf0]  ;;  %1689 = vmatmul.bf16.vlgmr.msra.gmra.mxu3 %v3536_v42  ;;  %v2648_v47 = vld [vmem:[#allocation5 + $0x420] sm:$0xf]  ;;  %v2921_v50 = vor.u32 %v3345_v41, %v2920_v40  ;;  %1663 = vmatmul.bf16.vlgmr.msra.gmra.mxu1 %v3538_v43  ;;  %v3199_v27 = vld [vmem:[#allocation5 + $0x1c4] sm:$0xf]  ;;  %v2221_v40 = vor.u32 %v3167_v18, %v2218_v19 }
  0x4b   :  { %v3277_v48 = vld [vmem:[#allocation5 + $0x42c] sm:$0xf0]  ;;  %v2776_v51 = vld [vmem:[#allocation5 + $0x520] sm:$0xf]  ;;  %v3049_v54 = vor.u32 %v3377_v45, %v3048_v44  ;;  %1712 = vmatpush.bf16.msrb.mxu1 %v2793_v49  ;;  %v2346_v30 = vld [vmem:[#allocation5 + $0x1d0] sm:$0xf0] }
  0x4c   :  { %v3309_v52 = vld [vmem:[#allocation5 + $0x52c] sm:$0xf0]  ;;  %v2904_v55 = vld [vmem:[#allocation5 + $0x620] sm:$0xf]  ;;  %v2649_v60 = vor.u32 %v3277_v48, %v2648_v47  ;;  %1725 = vmatpush.bf16.msrb.mxu2 %v2921_v50  ;;  %v3231_v31 = vld [vmem:[#allocation5 + $0x2c4] sm:$0xf]  ;;  %v2349_v44 = vor.u32 %v3199_v27, %v2346_v30 }
  0x4d   :  { %v3341_v56 = vld [vmem:[#allocation5 + $0x62c] sm:$0xf0]  ;;  %v3032_v57 = vld [vmem:[#allocation5 + $0x720] sm:$0xf]  ;;  %v2777_v0 = vor.u32 %v3309_v52, %v2776_v51  ;;  %1738 = vmatpush.bf16.msrb.mxu3 %v3049_v54  ;;  %v2474_v32 = vld [vmem:[#allocation5 + $0x2d0] sm:$0xf0] }
  0x4e   :  { %v3373_v58 = vld [vmem:[#allocation5 + $0x72c] sm:$0xf0]  ;;  %v2632_v59 = vld [vmem:[#allocation5 + $0x400] sm:$0xf]  ;;  %v2905_v1 = vor.u32 %v3341_v56, %v2904_v55  ;;  %1700 = vmatpush.bf16.msrb.mxu0 %v2649_v60  ;;  %v3263_v36 = vld [vmem:[#allocation5 + $0x3c4] sm:$0xf]  ;;  %v2477_v45 = vor.u32 %v3231_v31, %v2474_v32 }
  0x4f   :  { %v3273_v61 = vld [vmem:[#allocation5 + $0x40c] sm:$0xf0]  ;;  %v2760_v62 = vld [vmem:[#allocation5 + $0x500] sm:$0xf]  ;;  %v3033_v5 = vor.u32 %v3373_v58, %v3032_v57  ;;  %1713 = vmatpush.bf16.msrb.mxu1 %v2777_v0  ;;  %v2602_v37 = vld [vmem:[#allocation5 + $0x3d0] sm:$0xf0] }
  0x50   :  { %v3305_v63 = vld [vmem:[#allocation5 + $0x50c] sm:$0xf0]  ;;  %v2888_v2 = vld [vmem:[#allocation5 + $0x600] sm:$0xf]  ;;  %v2633_v12 = vor.u32 %v3273_v61, %v2632_v59  ;;  %1726 = vmatpush.bf16.msrb.mxu2 %v2905_v1  ;;  %v3163_v46 = vld [vmem:[#allocation5 + $0xa4] sm:$0xf]  ;;  %v2605_v49 = vor.u32 %v3263_v36, %v2602_v37 }
  0x51   :  { %v3337_v3 = vld [vmem:[#allocation5 + $0x60c] sm:$0xf0]  ;;  %v3016_v4 = vld [vmem:[#allocation5 + $0x700] sm:$0xf]  ;;  %v2761_v16 = vor.u32 %v3305_v63, %v2760_v62  ;;  %1739 = vmatpush.bf16.msrb.mxu3 %v3033_v5  ;;  %v2202_v47 = vld [vmem:[#allocation5 + $0xb0] sm:$0xf0] }
  0x52   :  { %v3369_v6 = vld [vmem:[#allocation5 + $0x70c] sm:$0xf0]  ;;  %v2889_v17 = vor.u32 %v3337_v3, %v2888_v2  ;;  %v78_v20 = vld.sshfl [vmem:[#allocation1 + $0x30] sm:$0xff pattern:$0x73625140]  ;;  %1701 = vmatpush.bf16.msrb.mxu0 %v2633_v12  ;;  %v2205_v55 = vor.u32 %v3163_v46, %v2202_v47 }
  0x53   :  { %v3017_v21 = vor.u32 %v3369_v6, %v3016_v4  ;;  %v76_v23 = vld.sshfl [vmem:[#allocation1 + $0x20] sm:$0xff pattern:$0x73625140]  ;;  %v79_v24 = vld.sshfl [vmem:[#allocation1 + $0x38] sm:$0xff pattern:$0x73625140]  ;;  %v3544_v33 = vpack.c.bf16 %v78_v20, %v78_v20  ;;  %1714 = vmatpush.bf16.msrb.mxu1 %v2761_v16 }
  0x54   :  { %v77_v28 = vld.sshfl [vmem:[#allocation1 + $0x28] sm:$0xff pattern:$0x73625140]  ;;  %1727 = vmatpush.bf16.msrb.mxu2 %v2889_v17  ;;  %v3546_v38 = vpack.c.bf16 %v76_v23, %v76_v23  ;;  %v3548_v39 = vpack.c.bf16 %v79_v24, %v79_v24  ;;  %v3195_v48 = vld [vmem:[#allocation5 + $0x1a4] sm:$0xf] }
  0x55   :  { %1740 = vmatpush.bf16.msrb.mxu3 %v3017_v21  ;;  %v3550_v41 = vpack.c.bf16 %v77_v28, %v77_v28  ;;  %v2330_v50 = vld [vmem:[#allocation5 + $0x1b0] sm:$0xf0]  ;;  %v3227_v51 = vld [vmem:[#allocation5 + $0x2a4] sm:$0xf] }
  0x56   :  { %1746 = vmatpush.bf16.msra.mxu0 %v2237_v22  ;;  %v2458_v52 = vld [vmem:[#allocation5 + $0x2b0] sm:$0xf0]  ;;  %v2333_v56 = vor.u32 %v3195_v48, %v2330_v50  ;;  %v3159_v58 = vld [vmem:[#allocation5 + $0x84] sm:$0xf] }
  0x57   :  { %1759 = vmatpush.bf16.msra.mxu1 %v2365_v25  ;;  %v2586_v54 = vld [vmem:[#allocation5 + $0x3b0] sm:$0xf0]  ;;  %v2461_v57 = vor.u32 %v3227_v51, %v2458_v52  ;;  %v3191_v60 = vld [vmem:[#allocation5 + $0x184] sm:$0xf] }
  0x58   :  { %1772 = vmatpush.bf16.msra.mxu2 %v2493_v26  ;;  %v2186_v59 = vld [vmem:[#allocation5 + $0x90] sm:$0xf0]  ;;  %v2589_v61 = vor.u32 %v3259_v53, %v2586_v54  ;;  %v3223_v63 = vld [vmem:[#allocation5 + $0x284] sm:$0xf] }
  0x59   :  { %1785 = vmatpush.bf16.msra.mxu3 %v2621_v29  ;;  %1728 = vmatmul.bf16.vlgmr.msrb.gmra.mxu2 %v3544_v33  ;;  %v2314_v62 = vld [vmem:[#allocation5 + $0x190] sm:$0xf0]  ;;  %v3255_v1 = vld [vmem:[#allocation5 + $0x384] sm:$0xf]  ;;  %v2189_v3 = vor.u32 %v3159_v58, %v2186_v59 }
  0x5a   :  { %1702 = vmatmul.bf16.vlgmr.msrb.gmra.mxu0 %v3546_v38  ;;  %1741 = vmatmul.bf16.vlgmr.msrb.gmra.mxu3 %v3548_v39  ;;  %v2442_v0 = vld [vmem:[#allocation5 + $0x290] sm:$0xf0]  ;;  %v2317_v4 = vor.u32 %v3191_v60, %v2314_v62  ;;  %v3155_v6 = vld [vmem:[#allocation5 + $0x64] sm:$0xf] }
  0x5b   :  { %1747 = vmatpush.bf16.msra.mxu0 %v2221_v40  ;;  %1715 = vmatmul.bf16.vlgmr.msrb.gmra.mxu1 %v3550_v41  ;;  %v2570_v2 = vld [vmem:[#allocation5 + $0x390] sm:$0xf0]  ;;  %v2445_v5 = vor.u32 %v3223_v63, %v2442_v0  ;;  %v3187_v8 = vld [vmem:[#allocation5 + $0x164] sm:$0xf] }
  0x5c   :  { %1760 = vmatpush.bf16.msra.mxu1 %v2349_v44  ;;  %1773 = vmatpush.bf16.msra.mxu2 %v2477_v45  ;;  %v2170_v7 = vld [vmem:[#allocation5 + $0x70] sm:$0xf0]  ;;  %v2573_v9 = vor.u32 %v3255_v1, %v2570_v2  ;;  %v3219_v11 = vld [vmem:[#allocation5 + $0x264] sm:$0xf] }
  0x5d   :  { %1786 = vmatpush.bf16.msra.mxu3 %v2605_v49  ;;  %v2298_v10 = vld [vmem:[#allocation5 + $0x170] sm:$0xf0]  ;;  %v3251_v13 = vld [vmem:[#allocation5 + $0x364] sm:$0xf]  ;;  %v2173_v15 = vor.u32 %v3155_v6, %v2170_v7 }
  0x5e   :  { %v2426_v12 = vld [vmem:[#allocation5 + $0x270] sm:$0xf0]  ;;  %v2301_v16 = vor.u32 %v3187_v8, %v2298_v10  ;;  %v3151_v18 = vld [vmem:[#allocation5 + $0x44] sm:$0xf] }
  0x5f   :  { %1748 = vmatpush.bf16.msra.mxu0 %v2205_v55  ;;  %v2554_v14 = vld [vmem:[#allocation5 + $0x370] sm:$0xf0]  ;;  %v2429_v17 = vor.u32 %v3219_v11, %v2426_v12  ;;  %v3183_v20 = vld [vmem:[#allocation5 + $0x144] sm:$0xf] }
  0x60   :  { %1761 = vmatpush.bf16.msra.mxu1 %v2333_v56  ;;  %1774 = vmatpush.bf16.msra.mxu2 %v2461_v57  ;;  %v2154_v19 = vld [vmem:[#allocation5 + $0x50] sm:$0xf0]  ;;  %v2557_v21 = vor.u32 %v3251_v13, %v2554_v14  ;;  %v3215_v23 = vld [vmem:[#allocation5 + $0x244] sm:$0xf] }
  0x61   :  { %1787 = vmatpush.bf16.msra.mxu3 %v2589_v61  ;;  %v2282_v22 = vld [vmem:[#allocation5 + $0x150] sm:$0xf0]  ;;  %v3247_v25 = vld [vmem:[#allocation5 + $0x344] sm:$0xf]  ;;  %v2157_v27 = vor.u32 %v3151_v18, %v2154_v19 }
  0x62   :  { %v2410_v24 = vld [vmem:[#allocation5 + $0x250] sm:$0xf0]  ;;  %v2285_v28 = vor.u32 %v3183_v20, %v2282_v22  ;;  %v3147_v30 = vld [vmem:[#allocation5 + $0x24] sm:$0xf] }
  0x63   :  { %1749 = vmatpush.bf16.msra.mxu0 %v2189_v3  ;;  %v2538_v26 = vld [vmem:[#allocation5 + $0x350] sm:$0xf0]  ;;  %v2413_v29 = vor.u32 %v3215_v23, %v2410_v24  ;;  %v3179_v32 = vld [vmem:[#allocation5 + $0x124] sm:$0xf] }
  0x64   :  { %1762 = vmatpush.bf16.msra.mxu1 %v2317_v4  ;;  %1775 = vmatpush.bf16.msra.mxu2 %v2445_v5  ;;  %v2138_v31 = vld [vmem:[#allocation5 + $0x30] sm:$0xf0]  ;;  %v2541_v36 = vor.u32 %v3247_v25, %v2538_v26  ;;  %v3211_v40 = vld [vmem:[#allocation5 + $0x224] sm:$0xf] }
  0x65   :  { %1788 = vmatpush.bf16.msra.mxu3 %v2573_v9  ;;  %v2266_v37 = vld [vmem:[#allocation5 + $0x130] sm:$0xf0]  ;;  %v3243_v45 = vld [vmem:[#allocation5 + $0x324] sm:$0xf]  ;;  %v2141_v47 = vor.u32 %v3147_v30, %v2138_v31 }
  0x66   :  { %v2394_v44 = vld [vmem:[#allocation5 + $0x230] sm:$0xf0]  ;;  %v3143_v48 = vld [vmem:[#allocation5 + $0x4] sm:$0xf]  ;;  %v2269_v50 = vor.u32 %v3179_v32, %v2266_v37 }
  0x67   :  { %1750 = vmatpush.bf16.msra.mxu0 %v2173_v15  ;;  %v2522_v46 = vld [vmem:[#allocation5 + $0x330] sm:$0xf0]  ;;  %v2397_v51 = vor.u32 %v3211_v40, %v2394_v44  ;;  %v3175_v52 = vld [vmem:[#allocation5 + $0x104] sm:$0xf] }
  0x68   :  { %1763 = vmatpush.bf16.msra.mxu1 %v2301_v16  ;;  %1776 = vmatpush.bf16.msra.mxu2 %v2429_v17  ;;  %v2122_v49 = vld [vmem:[#allocation5 + $0x10] sm:$0xf0]  ;;  %v3207_v54 = vld [vmem:[#allocation5 + $0x204] sm:$0xf]  ;;  %v2525_v55 = vor.u32 %v3243_v45, %v2522_v46 }
  0x69   :  { %1789 = vmatpush.bf16.msra.mxu3 %v2557_v21  ;;  %v2250_v53 = vld [vmem:[#allocation5 + $0x110] sm:$0xf0]  ;;  %v3239_v57 = vld [vmem:[#allocation5 + $0x304] sm:$0xf]  ;;  %v2125_v62 = vor.u32 %v3143_v48, %v2122_v49 }
  0x6a   :  { %v2378_v56 = vld [vmem:[#allocation5 + $0x210] sm:$0xf0]  ;;  %v3299_v59 = vld [vmem:[#allocation5 + $0x4e4] sm:$0xf]  ;;  %v2253_v2 = vor.u32 %v3175_v52, %v2250_v53 }
  0x6b   :  { %1751 = vmatpush.bf16.msra.mxu0 %v2157_v27  ;;  %v2506_v58 = vld [vmem:[#allocation5 + $0x310] sm:$0xf0]  ;;  %v3331_v61 = vld [vmem:[#allocation5 + $0x5e4] sm:$0xf]  ;;  %v2381_v3 = vor.u32 %v3207_v54, %v2378_v56 }
  0x6c   :  { %1764 = vmatpush.bf16.msra.mxu1 %v2285_v28  ;;  %1777 = vmatpush.bf16.msra.mxu2 %v2413_v29  ;;  %v2746_v60 = vld [vmem:[#allocation5 + $0x4f0] sm:$0xf0]  ;;  %v3363_v0 = vld [vmem:[#allocation5 + $0x6e4] sm:$0xf]  ;;  %v2509_v6 = vor.u32 %v3239_v57, %v2506_v58 }
  0x6d   :  { %1790 = vmatpush.bf16.msra.mxu3 %v2541_v36  ;;  %v2874_v63 = vld [vmem:[#allocation5 + $0x5f0] sm:$0xf0]  ;;  %v3395_v4 = vld [vmem:[#allocation5 + $0x7e4] sm:$0xf]  ;;  %v2749_v7 = vor.u32 %v3299_v59, %v2746_v60 }
  0x6e   :  { %v3002_v1 = vld [vmem:[#allocation5 + $0x6f0] sm:$0xf0]  ;;  %v2877_v8 = vor.u32 %v3331_v61, %v2874_v63  ;;  %v3295_v10 = vld [vmem:[#allocation5 + $0x4c4] sm:$0xf] }
  0x6f   :  { %1752 = vmatpush.bf16.msra.mxu0 %v2141_v47  ;;  %v3130_v5 = vld [vmem:[#allocation5 + $0x7f0] sm:$0xf0]  ;;  %v3005_v9 = vor.u32 %v3363_v0, %v3002_v1  ;;  %v3327_v12 = vld [vmem:[#allocation5 + $0x5c4] sm:$0xf] }
  0x70   :  { %1765 = vmatpush.bf16.msra.mxu1 %v2269_v50  ;;  %1778 = vmatpush.bf16.msra.mxu2 %v2397_v51  ;;  %v2730_v11 = vld [vmem:[#allocation5 + $0x4d0] sm:$0xf0]  ;;  %v3133_v13 = vor.u32 %v3395_v4, %v3130_v5  ;;  %v3359_v15 = vld [vmem:[#allocation5 + $0x6c4] sm:$0xf] }
  0x71   :  { %1791 = vmatpush.bf16.msra.mxu3 %v2525_v55  ;;  %v2858_v14 = vld [vmem:[#allocation5 + $0x5d0] sm:$0xf0]  ;;  %v3391_v17 = vld [vmem:[#allocation5 + $0x7c4] sm:$0xf]  ;;  %v2733_v19 = vor.u32 %v3295_v10, %v2730_v11 }
  0x72   :  { %v2986_v16 = vld [vmem:[#allocation5 + $0x6d0] sm:$0xf0]  ;;  %v2861_v20 = vor.u32 %v3327_v12, %v2858_v14  ;;  %v3291_v22 = vld [vmem:[#allocation5 + $0x4a4] sm:$0xf] }
  0x73   :  { %1753 = vmatpush.bf16.msra.mxu0 %v2125_v62  ;;  %v3114_v18 = vld [vmem:[#allocation5 + $0x7d0] sm:$0xf0]  ;;  %v2989_v21 = vor.u32 %v3359_v15, %v2986_v16  ;;  %v3323_v24 = vld [vmem:[#allocation5 + $0x5a4] sm:$0xf] }
  0x74   :  { %1766 = vmatpush.bf16.msra.mxu1 %v2253_v2  ;;  %1779 = vmatpush.bf16.msra.mxu2 %v2381_v3  ;;  %v2714_v23 = vld [vmem:[#allocation5 + $0x4b0] sm:$0xf0]  ;;  %v3117_v25 = vor.u32 %v3391_v17, %v3114_v18  ;;  %v3355_v27 = vld [vmem:[#allocation5 + $0x6a4] sm:$0xf] }
  0x75   :  { %1792 = vmatpush.bf16.msra.mxu3 %v2509_v6  ;;  %v2842_v26 = vld [vmem:[#allocation5 + $0x5b0] sm:$0xf0]  ;;  %v3387_v29 = vld [vmem:[#allocation5 + $0x7a4] sm:$0xf]  ;;  %v2717_v31 = vor.u32 %v3291_v22, %v2714_v23 }
  0x76   :  { %v2970_v28 = vld [vmem:[#allocation5 + $0x6b0] sm:$0xf0]  ;;  %1754 = vmatmul.bf16.vlgmr.msra.gmra.mxu0 %v3534_v35  ;;  %v2845_v32 = vor.u32 %v3323_v24, %v2842_v26  ;;  %v3287_v37 = vld [vmem:[#allocation5 + $0x484] sm:$0xf] }
  0x77   :  { %1798 = vmatpush.bf16.msrb.mxu0 %v2749_v7  ;;  %1780 = vmatmul.bf16.vlgmr.msra.gmra.mxu2 %v3532_v34  ;;  %v3098_v30 = vld [vmem:[#allocation5 + $0x7b0] sm:$0xf0]  ;;  %v2973_v36 = vor.u32 %v3355_v27, %v2970_v28  ;;  %v3319_v44 = vld [vmem:[#allocation5 + $0x584] sm:$0xf] }
  0x78   :  { %1811 = vmatpush.bf16.msrb.mxu1 %v2877_v8  ;;  %1824 = vmatpush.bf16.msrb.mxu2 %v3005_v9  ;;  %v2698_v40 = vld [vmem:[#allocation5 + $0x490] sm:$0xf0]  ;;  %v3101_v45 = vor.u32 %v3387_v29, %v3098_v30  ;;  %v3351_v47 = vld [vmem:[#allocation5 + $0x684] sm:$0xf] }
  0x79   :  { %1837 = vmatpush.bf16.msrb.mxu3 %v3133_v13  ;;  %1767 = vmatmul.bf16.vlgmr.msra.gmra.mxu1 %v3538_v43  ;;  %v2826_v46 = vld [vmem:[#allocation5 + $0x590] sm:$0xf0]  ;;  %v3383_v49 = vld [vmem:[#allocation5 + $0x784] sm:$0xf]  ;;  %v2701_v51 = vor.u32 %v3287_v37, %v2698_v40  ;;  %v2240_v40 = vld [vmem:[#allocation5 + $0xe8] sm:$0xf] }
  0x7a   :  { %1793 = vmatmul.bf16.vlgmr.msra.gmra.mxu3 %v3536_v42  ;;  %v2954_v48 = vld [vmem:[#allocation5 + $0x690] sm:$0xf0]  ;;  %v2829_v52 = vor.u32 %v3319_v44, %v2826_v46  ;;  %v3283_v54 = vld [vmem:[#allocation5 + $0x464] sm:$0xf]  ;;  %v3174_v44 = vld [vmem:[#allocation5 + $0xf4] sm:$0xf0] }
  0x7b   :  { %1799 = vmatpush.bf16.msrb.mxu0 %v2733_v19  ;;  %v3082_v50 = vld [vmem:[#allocation5 + $0x790] sm:$0xf0]  ;;  %v2957_v53 = vor.u32 %v3351_v47, %v2954_v48  ;;  %v3315_v56 = vld [vmem:[#allocation5 + $0x564] sm:$0xf]  ;;  %v3206_v47 = vld [vmem:[#allocation5 + $0x1f4] sm:$0xf0] }
  0x7c   :  { %1812 = vmatpush.bf16.msrb.mxu1 %v2861_v20  ;;  %1825 = vmatpush.bf16.msrb.mxu2 %v2989_v21  ;;  %v2682_v55 = vld [vmem:[#allocation5 + $0x470] sm:$0xf0]  ;;  %v3085_v57 = vor.u32 %v3383_v49, %v3082_v50  ;;  %v3347_v59 = vld [vmem:[#allocation5 + $0x664] sm:$0xf]  ;;  %v2496_v48 = vld [vmem:[#allocation5 + $0x2e8] sm:$0xf] }
  0x7d   :  { %1838 = vmatpush.bf16.msrb.mxu3 %v3117_v25  ;;  %v2810_v58 = vld [vmem:[#allocation5 + $0x570] sm:$0xf0]  ;;  %v3379_v61 = vld [vmem:[#allocation5 + $0x764] sm:$0xf]  ;;  %v2685_v63 = vor.u32 %v3283_v54, %v2682_v55  ;;  %v3238_v49 = vld [vmem:[#allocation5 + $0x2f4] sm:$0xf0]  ;;  %v2241_v55 = vor.u32 %v3174_v44, %v2240_v40 }
  0x7e   :  { %v2938_v60 = vld [vmem:[#allocation5 + $0x670] sm:$0xf0]  ;;  %v2813_v0 = vor.u32 %v3315_v56, %v2810_v58  ;;  %v3279_v2 = vld [vmem:[#allocation5 + $0x444] sm:$0xf]  ;;  %v2224_v58 = vld [vmem:[#allocation5 + $0xc8] sm:$0xf] }
  0x7f   :  { %1800 = vmatpush.bf16.msrb.mxu0 %v2717_v31  ;;  %v3066_v62 = vld [vmem:[#allocation5 + $0x770] sm:$0xf0]  ;;  %v2941_v1 = vor.u32 %v3347_v59, %v2938_v60  ;;  %v3311_v4 = vld [vmem:[#allocation5 + $0x544] sm:$0xf]  ;;  %v3170_v59 = vld [vmem:[#allocation5 + $0xd4] sm:$0xf0] }
  0x80   :  { %1813 = vmatpush.bf16.msrb.mxu1 %v2845_v32  ;;  %1826 = vmatpush.bf16.msrb.mxu2 %v2973_v36  ;;  %v2666_v3 = vld [vmem:[#allocation5 + $0x450] sm:$0xf0]  ;;  %v3069_v5 = vor.u32 %v3379_v61, %v3066_v62  ;;  %v3343_v7 = vld [vmem:[#allocation5 + $0x644] sm:$0xf]  ;;  %v2352_v60 = vld [vmem:[#allocation5 + $0x1c8] sm:$0xf] }
  0x81   :  { %1839 = vmatpush.bf16.msrb.mxu3 %v3101_v45  ;;  %v2794_v6 = vld [vmem:[#allocation5 + $0x550] sm:$0xf0]  ;;  %v3375_v9 = vld [vmem:[#allocation5 + $0x744] sm:$0xf]  ;;  %v2669_v11 = vor.u32 %v3279_v2, %v2666_v3  ;;  %v2368_v45 = vld [vmem:[#allocation5 + $0x1e8] sm:$0xf]  ;;  %v2225_v3 = vor.u32 %v3170_v59, %v2224_v58 }
  0x82   :  { %v2922_v8 = vld [vmem:[#allocation5 + $0x650] sm:$0xf0]  ;;  %v2797_v12 = vor.u32 %v3311_v4, %v2794_v6  ;;  %v3275_v14 = vld [vmem:[#allocation5 + $0x424] sm:$0xf]  ;;  %v2369_v56 = vor.u32 %v3206_v47, %v2368_v45  ;;  %v3202_v62 = vld [vmem:[#allocation5 + $0x1d4] sm:$0xf0] }
  0x83   :  { %1801 = vmatpush.bf16.msrb.mxu0 %v2701_v51  ;;  %v3050_v10 = vld [vmem:[#allocation5 + $0x750] sm:$0xf0]  ;;  %v2925_v13 = vor.u32 %v3343_v7, %v2922_v8  ;;  %v3307_v16 = vld [vmem:[#allocation5 + $0x524] sm:$0xf]  ;;  %v3266_v2 = vld [vmem:[#allocation5 + $0x3d4] sm:$0xf0]  ;;  %v2353_v4 = vor.u32 %v3202_v62, %v2352_v60 }
  0x84   :  { %1814 = vmatpush.bf16.msrb.mxu1 %v2829_v52  ;;  %1827 = vmatpush.bf16.msrb.mxu2 %v2957_v53  ;;  %v2650_v15 = vld [vmem:[#allocation5 + $0x430] sm:$0xf0]  ;;  %v3053_v17 = vor.u32 %v3375_v9, %v3050_v10  ;;  %v3339_v19 = vld [vmem:[#allocation5 + $0x624] sm:$0xf]  ;;  %v2624_v52 = vld [vmem:[#allocation5 + $0x3e8] sm:$0xf] }
  0x85   :  { %1840 = vmatpush.bf16.msrb.mxu3 %v3085_v57  ;;  %v2778_v18 = vld [vmem:[#allocation5 + $0x530] sm:$0xf0]  ;;  %v3371_v21 = vld [vmem:[#allocation5 + $0x724] sm:$0xf]  ;;  %v2653_v23 = vor.u32 %v3275_v14, %v2650_v15  ;;  %v3270_v53 = vld [vmem:[#allocation5 + $0x3f4] sm:$0xf0]  ;;  %v2497_v57 = vor.u32 %v3238_v49, %v2496_v48 }
  0x86   :  { %v2906_v20 = vld [vmem:[#allocation5 + $0x630] sm:$0xf0]  ;;  %v3271_v24 = vld [vmem:[#allocation5 + $0x404] sm:$0xf]  ;;  %v2781_v26 = vor.u32 %v3307_v16, %v2778_v18  ;;  %v2625_v61 = vor.u32 %v3270_v53, %v2624_v52  ;;  %v2208_v6 = vld [vmem:[#allocation5 + $0xa8] sm:$0xf] }
  0x87   :  { %1802 = vmatpush.bf16.msrb.mxu0 %v2685_v63  ;;  %v3034_v22 = vld [vmem:[#allocation5 + $0x730] sm:$0xf0]  ;;  %v2909_v27 = vor.u32 %v3339_v19, %v2906_v20  ;;  %v3303_v28 = vld [vmem:[#allocation5 + $0x504] sm:$0xf]  ;;  %v2480_v63 = vld [vmem:[#allocation5 + $0x2c8] sm:$0xf] }
  0x88   :  { %1815 = vmatpush.bf16.msrb.mxu1 %v2813_v0  ;;  %1828 = vmatpush.bf16.msrb.mxu2 %v2941_v1  ;;  %v2634_v25 = vld [vmem:[#allocation5 + $0x410] sm:$0xf0]  ;;  %v3335_v30 = vld [vmem:[#allocation5 + $0x604] sm:$0xf]  ;;  %v3037_v31 = vor.u32 %v3371_v21, %v3034_v22  ;;  %v3234_v0 = vld [vmem:[#allocation5 + $0x2d4] sm:$0xf0] }
  0x89   :  { %1841 = vmatpush.bf16.msrb.mxu3 %v3069_v5  ;;  %v2762_v29 = vld [vmem:[#allocation5 + $0x510] sm:$0xf0]  ;;  %v3367_v36 = vld [vmem:[#allocation5 + $0x704] sm:$0xf]  ;;  %v2637_v46 = vor.u32 %v3271_v24, %v2634_v25  ;;  %v2608_v1 = vld [vmem:[#allocation5 + $0x3c8] sm:$0xf]  ;;  %v2481_v5 = vor.u32 %v3234_v0, %v2480_v63 }
  0x8a   :  { %v2890_v32 = vld [vmem:[#allocation5 + $0x610] sm:$0xf0]  ;;  %v2765_v50 = vor.u32 %v3303_v28, %v2762_v29  ;;  %v3166_v7 = vld [vmem:[#allocation5 + $0xb4] sm:$0xf0]  ;;  %v2336_v8 = vld [vmem:[#allocation5 + $0x1a8] sm:$0xf]  ;;  %v2609_v9 = vor.u32 %v3266_v2, %v2608_v1 }
  0x8b   :  { %1803 = vmatpush.bf16.msrb.mxu0 %v2669_v11  ;;  %v3018_v37 = vld [vmem:[#allocation5 + $0x710] sm:$0xf0]  ;;  %v2893_v51 = vor.u32 %v3335_v30, %v2890_v32  ;;  %v3198_v10 = vld [vmem:[#allocation5 + $0x1b4] sm:$0xf0]  ;;  %v2464_v11 = vld [vmem:[#allocation5 + $0x2a8] sm:$0xf]  ;;  %v2209_v15 = vor.u32 %v3166_v7, %v2208_v6 }
  0x8c   :  { %1816 = vmatpush.bf16.msrb.mxu1 %v2797_v12  ;;  %1829 = vmatpush.bf16.msrb.mxu2 %v2925_v13  ;;  %v3021_v54 = vor.u32 %v3367_v36, %v3018_v37  ;;  %v3230_v12 = vld [vmem:[#allocation5 + $0x2b4] sm:$0xf0]  ;;  %v2592_v13 = vld [vmem:[#allocation5 + $0x3a8] sm:$0xf]  ;;  %v2337_v16 = vor.u32 %v3198_v10, %v2336_v8 }
  0x8d   :  { %1842 = vmatpush.bf16.msrb.mxu3 %v3053_v17  ;;  %v3262_v14 = vld [vmem:[#allocation5 + $0x3b4] sm:$0xf0]  ;;  %v2465_v17 = vor.u32 %v3230_v12, %v2464_v11  ;;  %v2192_v18 = vld [vmem:[#allocation5 + $0x88] sm:$0xf] }
  0x8e   :  { %v3162_v19 = vld [vmem:[#allocation5 + $0x94] sm:$0xf0]  ;;  %v2320_v20 = vld [vmem:[#allocation5 + $0x188] sm:$0xf]  ;;  %v2593_v21 = vor.u32 %v3262_v14, %v2592_v13 }
  0x8f   :  { %1804 = vmatpush.bf16.msrb.mxu0 %v2653_v23  ;;  %v3194_v22 = vld [vmem:[#allocation5 + $0x194] sm:$0xf0]  ;;  %v2448_v23 = vld [vmem:[#allocation5 + $0x288] sm:$0xf] }
  0x90   :  { %1817 = vmatpush.bf16.msrb.mxu1 %v2781_v26  ;;  %1830 = vmatpush.bf16.msrb.mxu2 %v2909_v27  ;;  %v3226_v24 = vld [vmem:[#allocation5 + $0x294] sm:$0xf0]  ;;  %v2576_v25 = vld [vmem:[#allocation5 + $0x388] sm:$0xf]  ;;  %v2193_v27 = vor.u32 %v3162_v19, %v2192_v18  ;;  %v2321_v28 = vor.u32 %v3194_v22, %v2320_v20 }
  0x91   :  { %1843 = vmatpush.bf16.msrb.mxu3 %v3037_v31  ;;  %v3258_v26 = vld [vmem:[#allocation5 + $0x394] sm:$0xf0]  ;;  %v2449_v29 = vor.u32 %v3226_v24, %v2448_v23  ;;  %v2176_v30 = vld [vmem:[#allocation5 + $0x68] sm:$0xf] }
  0x92   :  { %v3158_v31 = vld [vmem:[#allocation5 + $0x74] sm:$0xf0]  ;;  %v2304_v32 = vld [vmem:[#allocation5 + $0x168] sm:$0xf]  ;;  %v2577_v36 = vor.u32 %v3258_v26, %v2576_v25 }
  0x93   :  { %1805 = vmatpush.bf16.msrb.mxu0 %v2637_v46  ;;  %v3190_v37 = vld [vmem:[#allocation5 + $0x174] sm:$0xf0]  ;;  %v2432_v40 = vld [vmem:[#allocation5 + $0x268] sm:$0xf]  ;;  %v2177_v47 = vor.u32 %v3158_v31, %v2176_v30 }
  0x94   :  { %1818 = vmatpush.bf16.msrb.mxu1 %v2765_v50  ;;  %1831 = vmatpush.bf16.msrb.mxu2 %v2893_v51  ;;  %v3222_v44 = vld [vmem:[#allocation5 + $0x274] sm:$0xf0]  ;;  %v2560_v45 = vld [vmem:[#allocation5 + $0x368] sm:$0xf]  ;;  %v2305_v48 = vor.u32 %v3190_v37, %v2304_v32 }
  0x95   :  { %1844 = vmatpush.bf16.msrb.mxu3 %v3021_v54  ;;  %v3254_v46 = vld [vmem:[#allocation5 + $0x374] sm:$0xf0]  ;;  %v2433_v49 = vor.u32 %v3222_v44, %v2432_v40  ;;  %v2160_v50 = vld [vmem:[#allocation5 + $0x48] sm:$0xf] }
  0x96   :  { %1806 = vmatmul.bf16.vlgmr.msrb.gmra.mxu0 %v3546_v38  ;;  %v3154_v51 = vld [vmem:[#allocation5 + $0x54] sm:$0xf0]  ;;  %v2288_v52 = vld [vmem:[#allocation5 + $0x148] sm:$0xf]  ;;  %v2561_v53 = vor.u32 %v3254_v46, %v2560_v45 }
  0x97   :  { %1850 = vmatpush.bf16.msra.mxu0 %v2241_v55  ;;  %1832 = vmatmul.bf16.vlgmr.msrb.gmra.mxu2 %v3544_v33  ;;  %v3186_v54 = vld [vmem:[#allocation5 + $0x154] sm:$0xf0]  ;;  %v2416_v55 = vld [vmem:[#allocation5 + $0x248] sm:$0xf]  ;;  %v2161_v59 = vor.u32 %v3154_v51, %v2160_v50 }
  0x98   :  { %1863 = vmatpush.bf16.msra.mxu1 %v2369_v56  ;;  %1876 = vmatpush.bf16.msra.mxu2 %v2497_v57  ;;  %v3218_v56 = vld [vmem:[#allocation5 + $0x254] sm:$0xf0]  ;;  %v2544_v57 = vld [vmem:[#allocation5 + $0x348] sm:$0xf]  ;;  %v2289_v60 = vor.u32 %v3186_v54, %v2288_v52 }
  0x99   :  { %1889 = vmatpush.bf16.msra.mxu3 %v2625_v61  ;;  %1819 = vmatmul.bf16.vlgmr.msrb.gmra.mxu1 %v3550_v41  ;;  %v3250_v58 = vld [vmem:[#allocation5 + $0x354] sm:$0xf0]  ;;  %v2417_v61 = vor.u32 %v3218_v56, %v2416_v55  ;;  %v2144_v62 = vld [vmem:[#allocation5 + $0x28] sm:$0xf] }
  0x9a   :  { %1845 = vmatmul.bf16.vlgmr.msrb.gmra.mxu3 %v3548_v39  ;;  %v3150_v63 = vld [vmem:[#allocation5 + $0x34] sm:$0xf0]  ;;  %v2272_v0 = vld [vmem:[#allocation5 + $0x128] sm:$0xf]  ;;  %v2545_v1 = vor.u32 %v3250_v58, %v2544_v57 }
  0x9b   :  { %1851 = vmatpush.bf16.msra.mxu0 %v2225_v3  ;;  %v3182_v2 = vld [vmem:[#allocation5 + $0x134] sm:$0xf0]  ;;  %v2400_v3 = vld [vmem:[#allocation5 + $0x228] sm:$0xf]  ;;  %v2145_v7 = vor.u32 %v3150_v63, %v2144_v62 }
  0x9c   :  { %1864 = vmatpush.bf16.msra.mxu1 %v2353_v4  ;;  %1877 = vmatpush.bf16.msra.mxu2 %v2481_v5  ;;  %v3214_v4 = vld [vmem:[#allocation5 + $0x234] sm:$0xf0]  ;;  %v2528_v5 = vld [vmem:[#allocation5 + $0x328] sm:$0xf]  ;;  %v2273_v10 = vor.u32 %v3182_v2, %v2272_v0 }
  0x9d   :  { %1890 = vmatpush.bf16.msra.mxu3 %v2609_v9  ;;  %v3246_v6 = vld [vmem:[#allocation5 + $0x334] sm:$0xf0]  ;;  %v2128_v8 = vld [vmem:[#allocation5 + $0x8] sm:$0xf]  ;;  %v2401_v11 = vor.u32 %v3214_v4, %v2400_v3 }
  0x9e   :  { %v3146_v9 = vld [vmem:[#allocation5 + $0x14] sm:$0xf0]  ;;  %v2256_v12 = vld [vmem:[#allocation5 + $0x108] sm:$0xf] }
  0x9f   :  { %1852 = vmatpush.bf16.msra.mxu0 %v2209_v15  ;;  %v3178_v13 = vld [vmem:[#allocation5 + $0x114] sm:$0xf0]  ;;  %v2384_v14 = vld [vmem:[#allocation5 + $0x208] sm:$0xf]  ;;  %v2529_v15 = vor.u32 %v3246_v6, %v2528_v5  ;;  %v2129_v22 = vor.u32 %v3146_v9, %v2128_v8 }
  0xa0   :  { %1865 = vmatpush.bf16.msra.mxu1 %v2337_v16  ;;  %1878 = vmatpush.bf16.msra.mxu2 %v2465_v17  ;;  %v3210_v16 = vld [vmem:[#allocation5 + $0x214] sm:$0xf0]  ;;  %v2512_v17 = vld [vmem:[#allocation5 + $0x308] sm:$0xf]  ;;  %v2257_v26 = vor.u32 %v3178_v13, %v2256_v12 }
  0xa1   :  { %1891 = vmatpush.bf16.msra.mxu3 %v2593_v21  ;;  %v3242_v18 = vld [vmem:[#allocation5 + $0x314] sm:$0xf0]  ;;  %v2752_v19 = vld [vmem:[#allocation5 + $0x4e8] sm:$0xf] }
  0xa2   :  { %v3302_v20 = vld [vmem:[#allocation5 + $0x4f4] sm:$0xf0]  ;;  %v2880_v21 = vld [vmem:[#allocation5 + $0x5e8] sm:$0xf]  ;;  %v2513_v30 = vor.u32 %v3242_v18, %v2512_v17 }
  0xa3   :  { %1853 = vmatpush.bf16.msra.mxu0 %v2193_v27  ;;  %v3334_v23 = vld [vmem:[#allocation5 + $0x5f4] sm:$0xf0]  ;;  %v3008_v24 = vld [vmem:[#allocation5 + $0x6e8] sm:$0xf]  ;;  %v2385_v27 = vor.u32 %v3210_v16, %v2384_v14  ;;  %v2753_v31 = vor.u32 %v3302_v20, %v2752_v19 }
  0xa4   :  { %1866 = vmatpush.bf16.msra.mxu1 %v2321_v28  ;;  %1879 = vmatpush.bf16.msra.mxu2 %v2449_v29  ;;  %v3366_v25 = vld [vmem:[#allocation5 + $0x6f4] sm:$0xf0]  ;;  %v3136_v28 = vld [vmem:[#allocation5 + $0x7e8] sm:$0xf]  ;;  %v2881_v32 = vor.u32 %v3334_v23, %v2880_v21 }
  0xa5   :  { %1892 = vmatpush.bf16.msra.mxu3 %v2577_v36  ;;  %v3398_v29 = vld [vmem:[#allocation5 + $0x7f4] sm:$0xf0]  ;;  %v3009_v36 = vor.u32 %v3366_v25, %v3008_v24  ;;  %v2736_v37 = vld [vmem:[#allocation5 + $0x4c8] sm:$0xf] }
  0xa6   :  { %v3298_v40 = vld [vmem:[#allocation5 + $0x4d4] sm:$0xf0]  ;;  %v2864_v44 = vld [vmem:[#allocation5 + $0x5c8] sm:$0xf]  ;;  %v3137_v45 = vor.u32 %v3398_v29, %v3136_v28 }
  0xa7   :  { %1854 = vmatpush.bf16.msra.mxu0 %v2177_v47  ;;  %v3330_v46 = vld [vmem:[#allocation5 + $0x5d4] sm:$0xf0]  ;;  %v2992_v47 = vld [vmem:[#allocation5 + $0x6c8] sm:$0xf]  ;;  %v2737_v51 = vor.u32 %v3298_v40, %v2736_v37 }
  0xa8   :  { %1867 = vmatpush.bf16.msra.mxu1 %v2305_v48  ;;  %1880 = vmatpush.bf16.msra.mxu2 %v2433_v49  ;;  %v3362_v48 = vld [vmem:[#allocation5 + $0x6d4] sm:$0xf0]  ;;  %v3120_v49 = vld [vmem:[#allocation5 + $0x7c8] sm:$0xf]  ;;  %v2865_v52 = vor.u32 %v3330_v46, %v2864_v44 }
  0xa9   :  { %1893 = vmatpush.bf16.msra.mxu3 %v2561_v53  ;;  %v3394_v50 = vld [vmem:[#allocation5 + $0x7d4] sm:$0xf0]  ;;  %v2993_v53 = vor.u32 %v3362_v48, %v2992_v47  ;;  %v2720_v54 = vld [vmem:[#allocation5 + $0x4a8] sm:$0xf] }
  0xaa   :  { %v3294_v55 = vld [vmem:[#allocation5 + $0x4b4] sm:$0xf0]  ;;  %v2848_v56 = vld [vmem:[#allocation5 + $0x5a8] sm:$0xf]  ;;  %v3121_v57 = vor.u32 %v3394_v50, %v3120_v49 }
  0xab   :  { %1855 = vmatpush.bf16.msra.mxu0 %v2161_v59  ;;  %v3326_v58 = vld [vmem:[#allocation5 + $0x5b4] sm:$0xf0]  ;;  %v2976_v59 = vld [vmem:[#allocation5 + $0x6a8] sm:$0xf]  ;;  %v2721_v63 = vor.u32 %v3294_v55, %v2720_v54 }
  0xac   :  { %1868 = vmatpush.bf16.msra.mxu1 %v2289_v60  ;;  %1881 = vmatpush.bf16.msra.mxu2 %v2417_v61  ;;  %v3358_v60 = vld [vmem:[#allocation5 + $0x6b4] sm:$0xf0]  ;;  %v3104_v61 = vld [vmem:[#allocation5 + $0x7a8] sm:$0xf]  ;;  %v2849_v0 = vor.u32 %v3326_v58, %v2848_v56 }
  0xad   :  { %1894 = vmatpush.bf16.msra.mxu3 %v2545_v1  ;;  %v3390_v62 = vld [vmem:[#allocation5 + $0x7b4] sm:$0xf0]  ;;  %v2977_v1 = vor.u32 %v3358_v60, %v2976_v59  ;;  %v2704_v2 = vld [vmem:[#allocation5 + $0x488] sm:$0xf] }
  0xae   :  { %v3290_v3 = vld [vmem:[#allocation5 + $0x494] sm:$0xf0]  ;;  %v2832_v4 = vld [vmem:[#allocation5 + $0x588] sm:$0xf]  ;;  %v3105_v5 = vor.u32 %v3390_v62, %v3104_v61 }
  0xaf   :  { %1856 = vmatpush.bf16.msra.mxu0 %v2145_v7  ;;  %v3322_v6 = vld [vmem:[#allocation5 + $0x594] sm:$0xf0]  ;;  %v2960_v7 = vld [vmem:[#allocation5 + $0x688] sm:$0xf] }
  0xb0   :  { %1869 = vmatpush.bf16.msra.mxu1 %v2273_v10  ;;  %1882 = vmatpush.bf16.msra.mxu2 %v2401_v11  ;;  %v3354_v8 = vld [vmem:[#allocation5 + $0x694] sm:$0xf0]  ;;  %v3088_v9 = vld [vmem:[#allocation5 + $0x788] sm:$0xf]  ;;  %v2705_v11 = vor.u32 %v3290_v3, %v2704_v2  ;;  %v2833_v12 = vor.u32 %v3322_v6, %v2832_v4 }
  0xb1   :  { %1895 = vmatpush.bf16.msra.mxu3 %v2529_v15  ;;  %v3386_v10 = vld [vmem:[#allocation5 + $0x794] sm:$0xf0]  ;;  %v2961_v13 = vor.u32 %v3354_v8, %v2960_v7  ;;  %v2688_v14 = vld [vmem:[#allocation5 + $0x468] sm:$0xf]  ;;  %v3172_v7 = vld [vmem:[#allocation5 + $0xec] sm:$0xf] }
  0xb2   :  { %v3286_v15 = vld [vmem:[#allocation5 + $0x474] sm:$0xf0]  ;;  %v2816_v16 = vld [vmem:[#allocation5 + $0x568] sm:$0xf]  ;;  %v3089_v17 = vor.u32 %v3386_v10, %v3088_v9  ;;  %v2242_v8 = vld [vmem:[#allocation5 + $0xf8] sm:$0xf0] }
  0xb3   :  { %1857 = vmatpush.bf16.msra.mxu0 %v2129_v22  ;;  %v3318_v18 = vld [vmem:[#allocation5 + $0x574] sm:$0xf0]  ;;  %v2944_v19 = vld [vmem:[#allocation5 + $0x668] sm:$0xf]  ;;  %v2689_v23 = vor.u32 %v3286_v15, %v2688_v14  ;;  %v3204_v9 = vld [vmem:[#allocation5 + $0x1ec] sm:$0xf] }
  0xb4   :  { %1870 = vmatpush.bf16.msra.mxu1 %v2257_v26  ;;  %1883 = vmatpush.bf16.msra.mxu2 %v2385_v27  ;;  %v3350_v20 = vld [vmem:[#allocation5 + $0x674] sm:$0xf0]  ;;  %v3072_v21 = vld [vmem:[#allocation5 + $0x768] sm:$0xf]  ;;  %v2817_v25 = vor.u32 %v3318_v18, %v2816_v16  ;;  %v2498_v14 = vld [vmem:[#allocation5 + $0x2f8] sm:$0xf0] }
  0xb5   :  { %1896 = vmatpush.bf16.msra.mxu3 %v2513_v30  ;;  %v3382_v22 = vld [vmem:[#allocation5 + $0x774] sm:$0xf0]  ;;  %v2672_v24 = vld [vmem:[#allocation5 + $0x448] sm:$0xf]  ;;  %v2945_v26 = vor.u32 %v3350_v20, %v2944_v19  ;;  %v3268_v18 = vld [vmem:[#allocation5 + $0x3ec] sm:$0xf] }
  0xb6   :  { %1858 = vmatmul.bf16.vlgmr.msra.gmra.mxu0 %v3534_v35  ;;  %v3282_v27 = vld [vmem:[#allocation5 + $0x454] sm:$0xf0]  ;;  %v2800_v28 = vld [vmem:[#allocation5 + $0x548] sm:$0xf]  ;;  %v3073_v30 = vor.u32 %v3382_v22, %v3072_v21  ;;  %v2626_v19 = vld [vmem:[#allocation5 + $0x3f8] sm:$0xf0]  ;;  %v2245_v21 = vor.u32 %v3172_v7, %v2242_v8 }
  0xb7   :  { %1902 = vmatpush.bf16.msrb.mxu0 %v2753_v31  ;;  %1884 = vmatmul.bf16.vlgmr.msra.gmra.mxu2 %v3532_v34  ;;  %v3314_v29 = vld [vmem:[#allocation5 + $0x554] sm:$0xf0]  ;;  %v2928_v31 = vld [vmem:[#allocation5 + $0x648] sm:$0xf]  ;;  %v2673_v44 = vor.u32 %v3282_v27, %v2672_v24  ;;  %v3200_v27 = vld [vmem:[#allocation5 + $0x1cc] sm:$0xf] }
  0xb8   :  { %1915 = vmatpush.bf16.msrb.mxu1 %v2881_v32  ;;  %1928 = vmatpush.bf16.msrb.mxu2 %v3009_v36  ;;  %v3346_v32 = vld [vmem:[#allocation5 + $0x654] sm:$0xf0]  ;;  %v3568_v36 = vld [vmem:[#allocation7] sm:$0xf]  ;;  %v3056_v37 = vld [vmem:[#allocation5 + $0x748] sm:$0xf]  ;;  %v2801_v46 = vor.u32 %v3314_v29, %v2800_v28 }
  0xb9   :  { %1941 = vmatpush.bf16.msrb.mxu3 %v3137_v45  ;;  %1871 = vmatmul.bf16.vlgmr.msra.gmra.mxu1 %v3538_v43  ;;  %v3378_v40 = vld [vmem:[#allocation5 + $0x754] sm:$0xf0]  ;;  %v2656_v45 = vld [vmem:[#allocation5 + $0x428] sm:$0xf]  ;;  %v2929_v47 = vor.u32 %v3346_v32, %v2928_v31  ;;  %v354_v50 = vperm.slane %v3568_v36, 0 }
  0xba   :  { %1897 = vmatmul.bf16.vlgmr.msra.gmra.mxu3 %v3536_v42  ;;  %v3278_v48 = vld [vmem:[#allocation5 + $0x434] sm:$0xf0]  ;;  %v2784_v49 = vld [vmem:[#allocation5 + $0x528] sm:$0xf]  ;;  %v2354_v31 = vld [vmem:[#allocation5 + $0x1d8] sm:$0xf0] }
  0xbb   :  { %1903 = vmatpush.bf16.msrb.mxu0 %v2737_v51  ;;  %v3057_v51 = vor.u32 %v3378_v40, %v3056_v37  ;;  %v3342_v54 = vld [vmem:[#allocation5 + $0x634] sm:$0xf0]  ;;  %v3040_v55 = vld [vmem:[#allocation5 + $0x728] sm:$0xf]  ;;  %v3232_v32 = vld [vmem:[#allocation5 + $0x2cc] sm:$0xf] }
  0xbc   :  { %1916 = vmatpush.bf16.msrb.mxu1 %v2865_v52  ;;  %1929 = vmatpush.bf16.msrb.mxu2 %v2993_v53  ;;  %v3310_v52 = vld [vmem:[#allocation5 + $0x534] sm:$0xf0]  ;;  %v2912_v53 = vld [vmem:[#allocation5 + $0x628] sm:$0xf]  ;;  %v2482_v37 = vld [vmem:[#allocation5 + $0x2d8] sm:$0xf0] }
  0xbd   :  { %1942 = vmatpush.bf16.msrb.mxu3 %v3121_v57  ;;  %v3374_v56 = vld [vmem:[#allocation5 + $0x734] sm:$0xf0]  ;;  %v2657_v57 = vor.u32 %v3278_v48, %v2656_v45  ;;  %v2640_v58 = vld [vmem:[#allocation5 + $0x408] sm:$0xf]  ;;  %v2785_v61 = vor.u32 %v3310_v52, %v2784_v49  ;;  %v2913_v62 = vor.u32 %v3342_v54, %v2912_v53  ;;  %v2610_v45 = vld [vmem:[#allocation5 + $0x3d8] sm:$0xf0]  ;;  %v2357_v48 = vor.u32 %v3200_v27, %v2354_v31 }
  0xbe   :  { %v3274_v59 = vld [vmem:[#allocation5 + $0x414] sm:$0xf0]  ;;  %v3041_v3 = vor.u32 %v3374_v56, %v3040_v55  ;;  %v2485_v49 = vor.u32 %v3232_v32, %v2482_v37  ;;  %v3196_v52 = vld [vmem:[#allocation5 + $0x1ac] sm:$0xf]  ;;  %v2338_v55 = vld [vmem:[#allocation5 + $0x1b8] sm:$0xf0] }
  0xbf   :  { %1904 = vmatpush.bf16.msrb.mxu0 %v2721_v63  ;;  %v2768_v63 = vld [vmem:[#allocation5 + $0x508] sm:$0xf]  ;;  %v3338_v4 = vld [vmem:[#allocation5 + $0x614] sm:$0xf0]  ;;  %v3228_v56 = vld [vmem:[#allocation5 + $0x2ac] sm:$0xf] }
  0xc0   :  { %1917 = vmatpush.bf16.msrb.mxu1 %v2849_v0  ;;  %1930 = vmatpush.bf16.msrb.mxu2 %v2977_v1  ;;  %v3306_v0 = vld [vmem:[#allocation5 + $0x514] sm:$0xf0]  ;;  %v2896_v1 = vld [vmem:[#allocation5 + $0x608] sm:$0xf]  ;;  %v2450_v7 = vld [vmem:[#allocation5 + $0x298] sm:$0xf0] }
  0xc1   :  { %1943 = vmatpush.bf16.msrb.mxu3 %v3105_v5  ;;  %v3024_v5 = vld [vmem:[#allocation5 + $0x708] sm:$0xf]  ;;  %v3370_v6 = vld [vmem:[#allocation5 + $0x714] sm:$0xf0]  ;;  %v2769_v16 = vor.u32 %v3306_v0, %v2768_v63  ;;  %v3160_v0 = vld [vmem:[#allocation5 + $0x8c] sm:$0xf] }
  0xc2   :  { %v3025_v20 = vor.u32 %v3370_v6, %v3024_v5  ;;  %v2322_v5 = vld [vmem:[#allocation5 + $0x198] sm:$0xf0]  ;;  %v3224_v6 = vld [vmem:[#allocation5 + $0x28c] sm:$0xf] }
  0xc3   :  { %1905 = vmatpush.bf16.msrb.mxu0 %v2705_v11  ;;  %v2641_v11 = vor.u32 %v3274_v59, %v2640_v58  ;;  %v3260_v58 = vld [vmem:[#allocation5 + $0x3ac] sm:$0xf]  ;;  %v2594_v59 = vld [vmem:[#allocation5 + $0x3b8] sm:$0xf0] }
  0xc4   :  { %1918 = vmatpush.bf16.msrb.mxu1 %v2833_v12  ;;  %1931 = vmatpush.bf16.msrb.mxu2 %v2961_v13  ;;  %v2370_v12 = vld [vmem:[#allocation5 + $0x1f8] sm:$0xf0]  ;;  %v3236_v13 = vld [vmem:[#allocation5 + $0x2ec] sm:$0xf] }
  0xc5   :  { %1944 = vmatpush.bf16.msrb.mxu3 %v3089_v17  ;;  %v2897_v17 = vor.u32 %v3338_v4, %v2896_v1  ;;  %v2501_v24 = vor.u32 %v3236_v13, %v2498_v14  ;;  %v2194_v1 = vld [vmem:[#allocation5 + $0x98] sm:$0xf0]  ;;  %v2597_v4 = vor.u32 %v3260_v58, %v2594_v59  ;;  %v3256_v8 = vld [vmem:[#allocation5 + $0x38c] sm:$0xf]  ;;  %v2453_v13 = vor.u32 %v3224_v6, %v2450_v7 }
  0xc6   :  { %v1651_v60 = vpop.f32.mrf.mxu0  ;;  %v3156_v14 = vld [vmem:[#allocation5 + $0x6c] sm:$0xf]  ;;  %v2258_v7 = vld [vmem:[#allocation5 + $0x118] sm:$0xf0] }
  0xc7   :  { %1906 = vmatpush.bf16.msrb.mxu0 %v2689_v23  ;;  %v1652_v2 = vadd.f32 %v1651_v60, %v354_v50  ;;  %v1664_v10 = vpop.f32.mrf.mxu1  ;;  %v2373_v23 = vor.u32 %v3204_v9, %v2370_v12  ;;  %v3164_v50 = vld [vmem:[#allocation5 + $0xac] sm:$0xf]  ;;  %v2578_v9 = vld [vmem:[#allocation5 + $0x398] sm:$0xf0] }
  0xc8   :  { %1919 = vmatpush.bf16.msrb.mxu1 %v2817_v25  ;;  %1932 = vmatpush.bf16.msrb.mxu2 %v2945_v26  ;;  %v3168_v25 = vld [vmem:[#allocation5 + $0xcc] sm:$0xf]  ;;  %v2226_v26 = vld [vmem:[#allocation5 + $0xd8] sm:$0xf0] }
  0xc9   :  { %1945 = vmatpush.bf16.msrb.mxu3 %v3073_v30  ;;  %v1665_v15 = vadd.f32 %v1664_v10, %v1652_v2  ;;  %v2629_v30 = vor.u32 %v3268_v18, %v2626_v19  ;;  %v3192_v2 = vld [vmem:[#allocation5 + $0x18c] sm:$0xf]  ;;  %v2197_v10 = vor.u32 %v3160_v0, %v2194_v1  ;;  %v2581_v19 = vor.u32 %v3256_v8, %v2578_v9  ;;  %v2530_v0 = vld [vmem:[#allocation5 + $0x338] sm:$0xf0] }
  0xca   :  { %v2325_v12 = vor.u32 %v3192_v2, %v2322_v5  ;;  %v3184_v31 = vld [vmem:[#allocation5 + $0x14c] sm:$0xf] }
  0xcb   :  { %1907 = vmatpush.bf16.msrb.mxu0 %v2673_v44  ;;  %v3264_v44 = vld [vmem:[#allocation5 + $0x3cc] sm:$0xf] }
  0xcc   :  { %1920 = vmatpush.bf16.msrb.mxu1 %v2801_v46  ;;  %1933 = vmatpush.bf16.msrb.mxu2 %v2929_v47  ;;  %v1677_v22 = vpop.f32.mrf.mxu2  ;;  %v2229_v47 = vor.u32 %v3168_v25, %v2226_v26  ;;  %v2613_v54 = vor.u32 %v3264_v44, %v2610_v45  ;;  %v3216_v44 = vld [vmem:[#allocation5 + $0x24c] sm:$0xf]  ;;  %v2418_v45 = vld [vmem:[#allocation5 + $0x258] sm:$0xf0] }
  0xcd   :  { %1946 = vmatpush.bf16.msrb.mxu3 %v3057_v51  ;;  %v1678_v28 = vadd.f32 %v1677_v22, %v1665_v15  ;;  %v1690_v29 = vpop.f32.mrf.mxu3  ;;  %v2210_v51 = vld [vmem:[#allocation5 + $0xb8] sm:$0xf0]  ;;  %v3144_v2 = vld [vmem:[#allocation5 + $0xc] sm:$0xf] }
  0xce   :  { %v1653_v40 = vpop.f32.mrf.mxu0  ;;  %v2213_v60 = vor.u32 %v3164_v50, %v2210_v51  ;;  %v2178_v15 = vld [vmem:[#allocation5 + $0x78] sm:$0xf0]  ;;  %v3176_v6 = vld [vmem:[#allocation5 + $0x10c] sm:$0xf] }
  0xcf   :  { %1908 = vmatpush.bf16.msrb.mxu0 %v2657_v57  ;;  %v1691_v46 = vadd.f32 %v1690_v29, %v1678_v28  ;;  %v1666_v53 = vpop.f32.mrf.mxu1  ;;  %v2466_v57 = vld [vmem:[#allocation5 + $0x2b8] sm:$0xf0]  ;;  %v2181_v26 = vor.u32 %v3156_v14, %v2178_v15  ;;  %v3152_v29 = vld [vmem:[#allocation5 + $0x4c] sm:$0xf] }
  0xd0   :  { %1921 = vmatpush.bf16.msrb.mxu1 %v2785_v61  ;;  %1934 = vmatpush.bf16.msrb.mxu2 %v2913_v62  ;;  %v2341_v62 = vor.u32 %v3196_v52, %v2338_v55  ;;  %v2469_v63 = vor.u32 %v3228_v56, %v2466_v57  ;;  %v2434_v22 = vld [vmem:[#allocation5 + $0x278] sm:$0xf0]  ;;  %v3148_v55 = vld [vmem:[#allocation5 + $0x2c] sm:$0xf] }
  0xd1   :  { %1947 = vmatpush.bf16.msrb.mxu3 %v3041_v3  ;;  %v2290_v40 = vld [vmem:[#allocation5 + $0x158] sm:$0xf0]  ;;  %v3180_v57 = vld [vmem:[#allocation5 + $0x12c] sm:$0xf] }
  0xd2   :  { %v2293_v53 = vor.u32 %v3184_v31, %v2290_v40  ;;  %v2146_v56 = vld [vmem:[#allocation5 + $0x38] sm:$0xf0]  ;;  %v3208_v8 = vld [vmem:[#allocation5 + $0x20c] sm:$0xf] }
  0xd3   :  { %1909 = vmatpush.bf16.msrb.mxu0 %v2641_v11  ;;  %v2149_v1 = vor.u32 %v3148_v55, %v2146_v56  ;;  %v3300_v15 = vld [vmem:[#allocation5 + $0x4ec] sm:$0xf]  ;;  %v2738_v31 = vld [vmem:[#allocation5 + $0x4d8] sm:$0xf0] }
  0xd4   :  { %1922 = vmatpush.bf16.msrb.mxu1 %v2769_v16  ;;  %1935 = vmatpush.bf16.msrb.mxu2 %v2897_v17  ;;  %v1679_v61 = vpop.f32.mrf.mxu2  ;;  %v3188_v16 = vld [vmem:[#allocation5 + $0x16c] sm:$0xf]  ;;  %v2866_v40 = vld [vmem:[#allocation5 + $0x5d8] sm:$0xf0] }
  0xd5   :  { %1948 = vmatpush.bf16.msrb.mxu3 %v3025_v20  ;;  %v1692_v3 = vpop.f32.mrf.mxu3  ;;  %v2306_v20 = vld [vmem:[#allocation5 + $0x178] sm:$0xf0]  ;;  %v3212_v61 = vld [vmem:[#allocation5 + $0x22c] sm:$0xf] }
  0xd6   :  { %1910 = vmatmul.bf16.vlgmr.msrb.gmra.mxu0 %v3546_v38  ;;  %v2309_v27 = vor.u32 %v3188_v16, %v2306_v20  ;;  %v2130_v3 = vld [vmem:[#allocation5 + $0x18] sm:$0xf0]  ;;  %v3364_v20 = vld [vmem:[#allocation5 + $0x6ec] sm:$0xf] }
  0xd7   :  { %1954 = vmatpush.bf16.msra.mxu0 %v2245_v21  ;;  %1936 = vmatmul.bf16.vlgmr.msrb.gmra.mxu2 %v3544_v33  ;;  %v1703_v11 = vpop.f32.mrf.mxu0  ;;  %v3220_v21 = vld [vmem:[#allocation5 + $0x26c] sm:$0xf]  ;;  %v2754_v16 = vld [vmem:[#allocation5 + $0x4f8] sm:$0xf0] }
  0xd8   :  { %1967 = vmatpush.bf16.msra.mxu1 %v2373_v23  ;;  %1980 = vmatpush.bf16.msra.mxu2 %v2501_v24  ;;  %v1704_v17 = vadd.f32 %v1703_v11, %v1691_v46  ;;  %v1716_v18 = vpop.f32.mrf.mxu1  ;;  %v3252_v23 = vld [vmem:[#allocation5 + $0x36c] sm:$0xf]  ;;  %v2562_v24 = vld [vmem:[#allocation5 + $0x378] sm:$0xf0]  ;;  %v2437_v28 = vor.u32 %v3220_v21, %v2434_v22  ;;  %v2261_v22 = vor.u32 %v3176_v6, %v2258_v7 }
  0xd9   :  { %1993 = vmatpush.bf16.msra.mxu3 %v2629_v30  ;;  %1923 = vmatmul.bf16.vlgmr.msrb.gmra.mxu1 %v3550_v41  ;;  %v2162_v30 = vld [vmem:[#allocation5 + $0x58] sm:$0xf0]  ;;  %v2565_v37 = vor.u32 %v3252_v23, %v2562_v24  ;;  %v3396_v24 = vld [vmem:[#allocation5 + $0x7ec] sm:$0xf] }
  0xda   :  { %1949 = vmatmul.bf16.vlgmr.msrb.gmra.mxu3 %v3548_v39  ;;  %v1717_v25 = vadd.f32 %v1716_v18, %v1704_v17  ;;  %v2165_v50 = vor.u32 %v3152_v29, %v2162_v30  ;;  %v2386_v11 = vld [vmem:[#allocation5 + $0x218] sm:$0xf0]  ;;  %v3332_v17 = vld [vmem:[#allocation5 + $0x5ec] sm:$0xf]  ;;  %v2133_v18 = vor.u32 %v3144_v2, %v2130_v3  ;;  %v355_v2 = vperm.slane %v3568_v36, 1 }
  0xdb   :  { %1955 = vmatpush.bf16.msra.mxu0 %v2229_v47  ;;  %v3010_v21 = vld [vmem:[#allocation5 + $0x6f8] sm:$0xf0]  ;;  %v2389_v23 = vor.u32 %v3208_v8, %v2386_v11  ;;  %v3296_v30 = vld [vmem:[#allocation5 + $0x4cc] sm:$0xf] }
  0xdc   :  { %1968 = vmatpush.bf16.msra.mxu1 %v2357_v48  ;;  %1981 = vmatpush.bf16.msra.mxu2 %v2485_v49  ;;  %v1729_v32 = vpop.f32.mrf.mxu2  ;;  %v3248_v48 = vld [vmem:[#allocation5 + $0x34c] sm:$0xf]  ;;  %v2546_v49 = vld [vmem:[#allocation5 + $0x358] sm:$0xf0]  ;;  %v3013_v29 = vor.u32 %v3364_v20, %v3010_v21 }
  0xdd   :  { %1994 = vmatpush.bf16.msra.mxu3 %v2613_v54  ;;  %v1730_v46 = vadd.f32 %v1729_v32, %v1717_v25  ;;  %v1742_v47 = vpop.f32.mrf.mxu3  ;;  %v2421_v54 = vor.u32 %v3216_v44, %v2418_v45  ;;  %v2549_v59 = vor.u32 %v3248_v48, %v2546_v49  ;;  %v3138_v25 = vld [vmem:[#allocation5 + $0x7f8] sm:$0xf0]  ;;  %v3328_v32 = vld [vmem:[#allocation5 + $0x5cc] sm:$0xf]  ;;  %v2741_v48 = vor.u32 %v3296_v30, %v2738_v31 }
  0xde   :  { %v3360_v44 = vld [vmem:[#allocation5 + $0x6cc] sm:$0xf]  ;;  %v2994_v45 = vld [vmem:[#allocation5 + $0x6d8] sm:$0xf0]  ;;  %v2869_v49 = vor.u32 %v3328_v32, %v2866_v40 }
  0xdf   :  { %1956 = vmatpush.bf16.msra.mxu0 %v2213_v60  ;;  %v3575_v51 = vadd.f32 %v1742_v47, %v1730_v46  ;;  %v1705_v52 = vpop.f32.mrf.mxu0  ;;  %v2274_v60 = vld [vmem:[#allocation5 + $0x138] sm:$0xf0]  ;;  %v3392_v46 = vld [vmem:[#allocation5 + $0x7cc] sm:$0xf] }
  0xe0   :  { %1969 = vmatpush.bf16.msra.mxu1 %v2341_v62  ;;  %1982 = vmatpush.bf16.msra.mxu2 %v2469_v63  ;;  %v1718_v58 = vpop.f32.mrf.mxu1  ;;  %v2402_v62 = vld [vmem:[#allocation5 + $0x238] sm:$0xf0]  ;;  %v3244_v63 = vld [vmem:[#allocation5 + $0x32c] sm:$0xf] }
  0xe1   :  { %1995 = vmatpush.bf16.msra.mxu3 %v2597_v4  ;;  %v2277_v4 = vor.u32 %v3180_v57, %v2274_v60  ;;  %v2405_v5 = vor.u32 %v3212_v61, %v2402_v62  ;;  %v3122_v47 = vld [vmem:[#allocation5 + $0x7d8] sm:$0xf0]  ;;  %v3292_v52 = vld [vmem:[#allocation5 + $0x4ac] sm:$0xf] }
  0xe2   :  { %v3125_v55 = vor.u32 %v3392_v46, %v3122_v47  ;;  %v2850_v56 = vld [vmem:[#allocation5 + $0x5b8] sm:$0xf0]  ;;  %v3356_v57 = vld [vmem:[#allocation5 + $0x6ac] sm:$0xf] }
  0xe3   :  { %1957 = vmatpush.bf16.msra.mxu0 %v2197_v10  ;;  %v2533_v10 = vor.u32 %v3244_v63, %v2530_v0  ;;  %v2978_v58 = vld [vmem:[#allocation5 + $0x6b8] sm:$0xf0]  ;;  %v3288_v62 = vld [vmem:[#allocation5 + $0x48c] sm:$0xf] }
  0xe4   :  { %1970 = vmatpush.bf16.msra.mxu1 %v2325_v12  ;;  %1983 = vmatpush.bf16.msra.mxu2 %v2453_v13  ;;  %v1731_v9 = vpop.f32.mrf.mxu2  ;;  %v3240_v12 = vld [vmem:[#allocation5 + $0x30c] sm:$0xf]  ;;  %v2514_v13 = vld [vmem:[#allocation5 + $0x318] sm:$0xf0]  ;;  %v2981_v0 = vor.u32 %v3356_v57, %v2978_v58 }
  0xe5   :  { %1996 = vmatpush.bf16.msra.mxu3 %v2581_v19  ;;  %v1744_v14 = vpop.f32.mrf.mxu3  ;;  %v2882_v19 = vld [vmem:[#allocation5 + $0x5f8] sm:$0xf0]  ;;  %v3384_v6 = vld [vmem:[#allocation5 + $0x78c] sm:$0xf] }
  0xe6   :  { %v3106_v60 = vld [vmem:[#allocation5 + $0x7b8] sm:$0xf0]  ;;  %v3344_v31 = vld [vmem:[#allocation5 + $0x64c] sm:$0xf] }
  0xe7   :  { %1958 = vmatpush.bf16.msra.mxu0 %v2181_v26  ;;  %v2517_v26 = vor.u32 %v3240_v12, %v2514_v13  ;;  %v2690_v11 = vld [vmem:[#allocation5 + $0x478] sm:$0xf0]  ;;  %v3316_v12 = vld [vmem:[#allocation5 + $0x56c] sm:$0xf] }
  0xe8   :  { %1971 = vmatpush.bf16.msra.mxu1 %v2309_v27  ;;  %1984 = vmatpush.bf16.msra.mxu2 %v2437_v28  ;;  %v2757_v27 = vor.u32 %v3300_v15, %v2754_v16  ;;  %v2885_v28 = vor.u32 %v3332_v17, %v2882_v19  ;;  %v2818_v16 = vld [vmem:[#allocation5 + $0x578] sm:$0xf0]  ;;  %v3348_v17 = vld [vmem:[#allocation5 + $0x66c] sm:$0xf] }
  0xe9   :  { %1997 = vmatpush.bf16.msra.mxu3 %v2565_v37  ;;  %v3141_v37 = vor.u32 %v3396_v24, %v3138_v25  ;;  %v3380_v19 = vld [vmem:[#allocation5 + $0x76c] sm:$0xf]  ;;  %v3074_v20 = vld [vmem:[#allocation5 + $0x778] sm:$0xf0] }
  0xea   :  { %v3280_v25 = vld [vmem:[#allocation5 + $0x44c] sm:$0xf]  ;;  %v2802_v30 = vld [vmem:[#allocation5 + $0x558] sm:$0xf0] }
  0xeb   :  { %1959 = vmatpush.bf16.msra.mxu0 %v2165_v50  ;;  %v2997_v50 = vor.u32 %v3360_v44, %v2994_v45  ;;  %v2930_v32 = vld [vmem:[#allocation5 + $0x658] sm:$0xf0]  ;;  %v3376_v44 = vld [vmem:[#allocation5 + $0x74c] sm:$0xf] }
  0xec   :  { %1972 = vmatpush.bf16.msra.mxu1 %v2293_v53  ;;  %1985 = vmatpush.bf16.msra.mxu2 %v2421_v54  ;;  %v2722_v53 = vld [vmem:[#allocation5 + $0x4b8] sm:$0xf0]  ;;  %v3324_v54 = vld [vmem:[#allocation5 + $0x5ac] sm:$0xf] }
  0xed   :  { %1998 = vmatpush.bf16.msra.mxu3 %v2549_v59  ;;  %v3388_v59 = vld [vmem:[#allocation5 + $0x7ac] sm:$0xf]  ;;  %v2725_v61 = vor.u32 %v3292_v52, %v2722_v53  ;;  %v2853_v63 = vor.u32 %v3324_v54, %v2850_v56  ;;  %v3058_v45 = vld [vmem:[#allocation5 + $0x758] sm:$0xf0] }
  0xee   :  { %v3109_v3 = vor.u32 %v3388_v59, %v3106_v60  ;;  %v3276_v52 = vld [vmem:[#allocation5 + $0x42c] sm:$0xf]  ;;  %v2658_v53 = vld [vmem:[#allocation5 + $0x438] sm:$0xf0]  ;;  %v3061_v56 = vor.u32 %v3376_v44, %v3058_v45 }
  0xef   :  { %1960 = vmatpush.bf16.msra.mxu0 %v2149_v1  ;;  %v2706_v1 = vld [vmem:[#allocation5 + $0x498] sm:$0xf0]  ;;  %v3308_v54 = vld [vmem:[#allocation5 + $0x52c] sm:$0xf] }
  0xf0   :  { %1973 = vmatpush.bf16.msra.mxu1 %v2277_v4  ;;  %1986 = vmatpush.bf16.msra.mxu2 %v2405_v5  ;;  %v2834_v4 = vld [vmem:[#allocation5 + $0x598] sm:$0xf0]  ;;  %v3352_v5 = vld [vmem:[#allocation5 + $0x68c] sm:$0xf]  ;;  %v2709_v7 = vor.u32 %v3288_v62, %v2706_v1  ;;  %v2661_v62 = vor.u32 %v3276_v52, %v2658_v53 }
  0xf1   :  { %1999 = vmatpush.bf16.msra.mxu3 %v2533_v10  ;;  %v3284_v10 = vld [vmem:[#allocation5 + $0x46c] sm:$0xf]  ;;  %v2786_v57 = vld [vmem:[#allocation5 + $0x538] sm:$0xf0] }
  0xf2   :  { %v3340_v58 = vld [vmem:[#allocation5 + $0x62c] sm:$0xf]  ;;  %v2914_v59 = vld [vmem:[#allocation5 + $0x638] sm:$0xf0] }
  0xf3   :  { %1961 = vmatpush.bf16.msra.mxu0 %v2133_v18  ;;  %v1755_v8 = vpop.f32.mrf.mxu0  ;;  %v2946_v18 = vld [vmem:[#allocation5 + $0x678] sm:$0xf0]  ;;  %v3372_v60 = vld [vmem:[#allocation5 + $0x72c] sm:$0xf] }
  0xf4   :  { %1974 = vmatpush.bf16.msra.mxu1 %v2261_v22  ;;  %1987 = vmatpush.bf16.msra.mxu2 %v2389_v23  ;;  %v1756_v13 = vadd.f32 %v1755_v8, %v355_v2  ;;  %v2693_v22 = vor.u32 %v3284_v10, %v2690_v11  ;;  %v2821_v23 = vor.u32 %v3316_v12, %v2818_v16  ;;  %v3272_v1 = vld [vmem:[#allocation5 + $0x40c] sm:$0xf]  ;;  %v3026_v8 = vld [vmem:[#allocation5 + $0x718] sm:$0xf0] }
  0xf5   :  { %2000 = vmatpush.bf16.msra.mxu3 %v2517_v26  ;;  %v2949_v24 = vor.u32 %v3348_v17, %v2946_v18  ;;  %v2674_v26 = vld [vmem:[#allocation5 + $0x458] sm:$0xf0]  ;;  %v3304_v2 = vld [vmem:[#allocation5 + $0x50c] sm:$0xf]  ;;  %v2058_v18 = vmax.f32 %v3575_v51, 0.0 }
  0xf6   :  { %1962 = vmatmul.bf16.vlgmr.msra.gmra.mxu0 %v3534_v35  ;;  %v2962_v35 = vld [vmem:[#allocation5 + $0x698] sm:$0xf0]  ;;  %v1768_v14 = vpop.f32.mrf.mxu1  ;;  %v2677_v46 = vor.u32 %v3280_v25, %v2674_v26 }
  0xf7   :  { %2006 = vmatpush.bf16.msrb.mxu0 %v2757_v27  ;;  %1988 = vmatmul.bf16.vlgmr.msra.gmra.mxu2 %v3532_v34  ;;  %v3320_v34 = vld [vmem:[#allocation5 + $0x58c] sm:$0xf]  ;;  %v2965_v9 = vor.u32 %v3352_v5, %v2962_v35  ;;  %v1769_v21 = vadd.f32 %v1768_v14, %v1756_v13  ;;  %v2770_v5 = vld [vmem:[#allocation5 + $0x518] sm:$0xf0] }
  0xf8   :  { %2019 = vmatpush.bf16.msrb.mxu1 %v2885_v28  ;;  %2032 = vmatpush.bf16.msrb.mxu2 %v3013_v29  ;;  %v3312_v27 = vld [vmem:[#allocation5 + $0x54c] sm:$0xf]  ;;  %v3077_v29 = vor.u32 %v3380_v19, %v3074_v20 }
  0xf9   :  { %2045 = vmatpush.bf16.msrb.mxu3 %v3141_v37  ;;  %1975 = vmatmul.bf16.vlgmr.msra.gmra.mxu1 %v3538_v43  ;;  %v2837_v43 = vor.u32 %v3320_v34, %v2834_v4  ;;  %v2642_v34 = vld [vmem:[#allocation5 + $0x418] sm:$0xf0]  ;;  %v3336_v35 = vld [vmem:[#allocation5 + $0x60c] sm:$0xf] }
  0xfa   :  { %2001 = vmatmul.bf16.vlgmr.msra.gmra.mxu3 %v3536_v42  ;;  %v3090_v42 = vld [vmem:[#allocation5 + $0x798] sm:$0xf0]  ;;  %v1781_v28 = vpop.f32.mrf.mxu2 }
  0xfb   :  { %2007 = vmatpush.bf16.msrb.mxu0 %v2741_v48  ;;  %v3093_v15 = vor.u32 %v3384_v6, %v3090_v42  ;;  %v1782_v37 = vadd.f32 %v1781_v28, %v1769_v21  ;;  %v1757_v48 = vpop.f32.mrf.mxu0  ;;  %v2898_v6 = vld [vmem:[#allocation5 + $0x618] sm:$0xf0] }
  0xfc   :  { %2020 = vmatpush.bf16.msrb.mxu1 %v2869_v49  ;;  %2033 = vmatpush.bf16.msrb.mxu2 %v2997_v50  ;;  %v2805_v49 = vor.u32 %v3312_v27, %v2802_v30  ;;  %v2933_v50 = vor.u32 %v3344_v31, %v2930_v32  ;;  %v2901_v10 = vor.u32 %v3336_v35, %v2898_v6 }
  0xfd   :  { %2046 = vmatpush.bf16.msrb.mxu3 %v3125_v55  ;;  %v1794_v40 = vpop.f32.mrf.mxu3 }
  0xfe   :  { %v1795_v47 = vadd.f32 %v1794_v40, %v1782_v37  ;;  %v1770_v55 = vpop.f32.mrf.mxu1 }
  0xff   :  { %2008 = vmatpush.bf16.msrb.mxu0 %v2725_v61  ;;  %v3042_v61 = vld [vmem:[#allocation5 + $0x738] sm:$0xf0] }
 0x100   :  { %2021 = vmatpush.bf16.msrb.mxu1 %v2853_v63  ;;  %2034 = vmatpush.bf16.msrb.mxu2 %v2981_v0  ;;  %v2789_v63 = vor.u32 %v3308_v54, %v2786_v57  ;;  %v2917_v0 = vor.u32 %v3340_v58, %v2914_v59  ;;  %v3045_v4 = vor.u32 %v3372_v60, %v3042_v61 }
 0x101   :  { %2047 = vmatpush.bf16.msrb.mxu3 %v3109_v3 }
 0x102   :  { %v1783_v3 = vpop.f32.mrf.mxu2 }
 0x103   :  { %2009 = vmatpush.bf16.msrb.mxu0 %v2709_v7  ;;  %v3368_v7 = vld [vmem:[#allocation5 + $0x70c] sm:$0xf] }
 0x104   :  { %2022 = vmatpush.bf16.msrb.mxu1 %v2837_v43  ;;  %2035 = vmatpush.bf16.msrb.mxu2 %v2965_v9  ;;  %v2645_v43 = vor.u32 %v3272_v1, %v2642_v34  ;;  %v2773_v9 = vor.u32 %v3304_v2, %v2770_v5  ;;  %v3029_v11 = vor.u32 %v3368_v7, %v3026_v8  ;;  %v357_v8 = vperm.slane %v3568_v36, 3 }
 0x105   :  { %2048 = vmatpush.bf16.msrb.mxu3 %v3093_v15  ;;  %v1796_v42 = vpop.f32.mrf.mxu3  ;;  %v3589_v15 = vld [vmem:[%s3608_s3] sm:$0xf] }
 0x106   :  { %v2066_v60 = vperm.slane %v3589_v15, 2 }
 0x107   :  { %2010 = vmatpush.bf16.msrb.mxu0 %v2693_v22 }
 0x108   :  { %2023 = vmatpush.bf16.msrb.mxu1 %v2821_v23  ;;  %2036 = vmatpush.bf16.msrb.mxu2 %v2949_v24 }
 0x109   :  { %2049 = vmatpush.bf16.msrb.mxu3 %v3077_v29  ;;  %v356_v29 = vperm.slane %v3568_v36, 2 }
 0x10b   :  { %2011 = vmatpush.bf16.msrb.mxu0 %v2677_v46 }
 0x10c   :  { %2024 = vmatpush.bf16.msrb.mxu1 %v2805_v49  ;;  %2037 = vmatpush.bf16.msrb.mxu2 %v2933_v50 }
 0x10d   :  { %2050 = vmatpush.bf16.msrb.mxu3 %v3061_v56 }
 0x10f   :  { %2012 = vmatpush.bf16.msrb.mxu0 %v2661_v62 }
 0x110   :  { %2025 = vmatpush.bf16.msrb.mxu1 %v2789_v63  ;;  %2038 = vmatpush.bf16.msrb.mxu2 %v2917_v0 }
 0x111   :  { %2051 = vmatpush.bf16.msrb.mxu3 %v3045_v4 }
 0x113   :  { %2013 = vmatpush.bf16.msrb.mxu0 %v2645_v43  ;;  %v1807_v12 = vpop.f32.mrf.mxu0 }
 0x114   :  { %2026 = vmatpush.bf16.msrb.mxu1 %v2773_v9  ;;  %2039 = vmatpush.bf16.msrb.mxu2 %v2901_v10  ;;  %v1808_v13 = vadd.f32 %v1807_v12, %v1795_v47 }
 0x115   :  { %2052 = vmatpush.bf16.msrb.mxu3 %v3029_v11 }
 0x116   :  { %2014 = vmatmul.bf16.vlgmr.msrb.gmra.mxu0 %v3546_v38  ;;  %v1820_v14 = vpop.f32.mrf.mxu1  ;;  %v2064_v38 = vperm.slane %v3589_v15, 0 }
 0x117   :  { %2027 = vmatmul.bf16.vlgmr.msrb.gmra.mxu1 %v3550_v41  ;;  %2040 = vmatmul.bf16.vlgmr.msrb.gmra.mxu2 %v3544_v33  ;;  %v1821_v16 = vadd.f32 %v1820_v14, %v1808_v13  ;;  %v2065_v33 = vperm.slane %v3589_v15, 1 }
 0x118   :  { %2053 = vmatmul.bf16.vlgmr.msrb.gmra.mxu3 %v3548_v39  ;;  %v2072_v22 = vmul.f32 %v2064_v38, %v2058_v18 }
 0x11a   :  { %v1833_v17 = vpop.f32.mrf.mxu2  ;;  %v2077_v27 = vsel %vm2076_vm0, %v2072_v22, 0.0 }
 0x11b   :  { %v1834_v19 = vadd.f32 %v1833_v17, %v1821_v16  ;;  %v1809_v39 = vpop.f32.mrf.mxu0 }
 0x11d   :  { %v1846_v41 = vpop.f32.mrf.mxu3 }
 0x11e   :  { %v1847_v20 = vadd.f32 %v1846_v41, %v1834_v19  ;;  %v1822_v21 = vpop.f32.mrf.mxu1 }
 0x11f   :  { %v2067_v21 = vperm.slane %v3589_v15, 3 }
 0x120   :  { %v2059_v23 = vmax.f32 %v1847_v20, 0.0 }
 0x122   :  { %v2073_v24 = vmul.f32 %v2065_v33, %v2059_v23  ;;  %v1835_v25 = vpop.f32.mrf.mxu2 }
 0x124   :  { %v2078_v28 = vsel %vm2076_vm0, %v2073_v24, 0.0 }
 0x125   :  { %v1848_v26 = vpop.f32.mrf.mxu3  ;;  %v2079_v51 = vadd.f32 %v2078_v28, %v2077_v27  ;;  %v3404_v27 = vld [vmem:[#allocation2] ss:$0 sm:$0xff] }
 0x133   :  { %v1859_v30 = vpop.f32.mrf.mxu0 }
 0x134   :  { %v1860_v31 = vadd.f32 %v1859_v30, %v356_v29 }
 0x136   :  { %v1872_v32 = vpop.f32.mrf.mxu1 }
 0x137   :  { %v1873_v37 = vadd.f32 %v1872_v32, %v1860_v31 }
 0x13a   :  { %v1885_v40 = vpop.f32.mrf.mxu2 }
 0x13b   :  { %v1886_v44 = vadd.f32 %v1885_v40, %v1873_v37  ;;  %v1861_v47 = vpop.f32.mrf.mxu0 }
 0x13d   :  { %v1898_v45 = vpop.f32.mrf.mxu3 }
 0x13e   :  { %v1899_v46 = vadd.f32 %v1898_v45, %v1886_v44  ;;  %v1874_v48 = vpop.f32.mrf.mxu1 }
 0x142   :  { %v1887_v49 = vpop.f32.mrf.mxu2 }
 0x145   :  { %v1900_v50 = vpop.f32.mrf.mxu3 }
 0x153   :  { %v1911_v52 = vpop.f32.mrf.mxu0 }
 0x154   :  { %v1912_v53 = vadd.f32 %v1911_v52, %v1899_v46 }
 0x156   :  { %v1924_v54 = vpop.f32.mrf.mxu1 }
 0x157   :  { %v1925_v55 = vadd.f32 %v1924_v54, %v1912_v53 }
 0x15a   :  { %v1937_v56 = vpop.f32.mrf.mxu2 }
 0x15b   :  { %v1938_v57 = vadd.f32 %v1937_v56, %v1925_v55  ;;  %v1913_v61 = vpop.f32.mrf.mxu0 }
 0x15d   :  { %v1950_v58 = vpop.f32.mrf.mxu3 }
 0x15e   :  { %v1951_v59 = vadd.f32 %v1950_v58, %v1938_v57  ;;  %v1926_v62 = vpop.f32.mrf.mxu1 }
 0x160   :  { %v2060_v63 = vmax.f32 %v1951_v59, 0.0 }
 0x162   :  { %v2074_v0 = vmul.f32 %v2066_v60, %v2060_v63  ;;  %v1939_v1 = vpop.f32.mrf.mxu2 }
 0x164   :  { %v2080_v2 = vsel %vm2076_vm0, %v2074_v0, 0.0 }
 0x165   :  { %v1952_v34 = vpop.f32.mrf.mxu3  ;;  %v2081_v3 = vadd.f32 %v2080_v2, %v2079_v51 }
 0x173   :  { %v1963_v4 = vpop.f32.mrf.mxu0 }
 0x174   :  { %v1964_v10 = vadd.f32 %v1963_v4, %v357_v8 }
 0x176   :  { %v1976_v5 = vpop.f32.mrf.mxu1 }
 0x177   :  { %v1977_v11 = vadd.f32 %v1976_v5, %v1964_v10 }
 0x17a   :  { %v1989_v35 = vpop.f32.mrf.mxu2 }
 0x17b   :  { %v1965_v42 = vpop.f32.mrf.mxu0  ;;  %v1990_v12 = vadd.f32 %v1989_v35, %v1977_v11 }
 0x17d   :  { %v2002_v6 = vpop.f32.mrf.mxu3 }
 0x17e   :  { %v1978_v7 = vpop.f32.mrf.mxu1  ;;  %v2003_v13 = vadd.f32 %v2002_v6, %v1990_v12 }
 0x182   :  { %v1991_v43 = vpop.f32.mrf.mxu2 }
 0x185   :  { %v2004_v9 = vpop.f32.mrf.mxu3 }
 0x193   :  { %v2015_v14 = vpop.f32.mrf.mxu0 }
 0x194   :  { %v2028_v16 = vpop.f32.mrf.mxu1  ;;  %v2016_v17 = vadd.f32 %v2015_v14, %v2003_v13 }
 0x196   :  { %v2029_v18 = vadd.f32 %v2028_v16, %v2016_v17 }
 0x19a   :  { %v2041_v38 = vpop.f32.mrf.mxu2 }
 0x19b   :  { %v2042_v19 = vadd.f32 %v2041_v38, %v2029_v18  ;;  %v2054_v41 = vpop.f32.mrf.mxu3  ;;  %v2017_v20 = vpop.f32.mrf.mxu0 }
 0x19c   :  { %v2030_v33 = vpop.f32.mrf.mxu1 }
 0x19d   :  { %v2055_v39 = vadd.f32 %v2054_v41, %v2042_v19 }
 0x19f   :  { %v2061_v22 = vmax.f32 %v2055_v39, 0.0 }
 0x1a1   :  { %v2075_v36 = vmul.f32 %v2067_v21, %v2061_v22 }
 0x1a2   :  { %v2043_v23 = vpop.f32.mrf.mxu2 }
 0x1a3   :  { %v2056_v24 = vpop.f32.mrf.mxu3  ;;  %v2082_v25 = vsel %vm2076_vm0, %v2075_v36, 0.0 }
 0x1a4   :  { %v2083_v26 = vadd.f32 %v2082_v25, %v2081_v3 }
 0x1a6   :  { %2084 = vadd.xlane.f32.xlu0 %v2083_v26 }
 0x219   :  { %v2085_v28 = vpop.xlane.xlu0 %2084 }
 0x21a   :  { %v2090_v51 = vadd.f32 %v3404_v27, %v2085_v28 }
 0x21c   :  { %v3142_v29 = vmul.f32 -1.442695, %v2090_v51 }
 0x21e   :  { %3405 = vpow2.f32 %v3142_v29 }
 0x224   :  { %v3406_v30 = vpop.eup %3405 }
 0x225   :  { %v2094_v31 = vadd.f32 1.0, %v3406_v30 }
 0x227   :  { %3407 = vrcp.f32 %v2094_v31  ;;  %v2106_v15 = vand.u32 2147483648, %v2094_v31  ;;  %v2104_v45 = vand.u32 2147483647, %v2094_v31  ;;  %vm2100_vm2 = vweird.f32 %v2094_v31 }
 0x229   :  { %v2107_v47 = vor.u32 1.1754944e-38, %v2106_v15  ;;  %vm2105_vm5 = vcmp.eq.f32.partialorder %v2104_v45, 8.507059e+37 }
 0x22d   :  { %v3408_v32 = vpop.eup %3407 }
 0x22e   :  { %v2096_v37 = vmul.f32 %v3408_v32, %v2094_v31  ;;  %vm2101_vm1 = vweird.f32 %v3408_v32 }
 0x22f   :  { %vm2102_vm3 = vmor %vm2100_vm2, %vm2101_vm1 }
 0x230   :  { %v2097_v40 = vsub.f32 1.0, %v2096_v37 }
 0x232   :  { %v2098_v44 = vmul.f32 %v3408_v32, %v2097_v40 }
 0x234   :  { %v2099_v46 = vadd.f32 %v3408_v32, %v2098_v44 }
 0x236   :  { %v2103_v48 = vsel %vm2102_vm3, %v3408_v32, %v2099_v46 }
 0x237   :  { %v2108_v49 = vsel %vm2105_vm5, %v2107_v47, %v2103_v48 }
 0x238   :  { %2111 = vst.msk [vmem:[%s3610_s5] sm:$0x3] %vm2110_vm4, %v2108_v49 }
 0x239   :  { %2116 = vsyncpa [#allocation4], 1 }
 0x23a   :  { %2117 = vsyncpa [#allocation6], 1 }

</bundles_post_ra>
